<compile_context>
chip_gen: v7x
topology: tpu7x:2x2x1
jax: 0.10.0
libtpu: 0.0.40
codegen_flags: <defaults>
</compile_context>

<pallas_src>
import functools

import jax
import jax.numpy as jnp
from jax.experimental import pallas as pl
from jax.experimental.pallas import tpu as pltpu

K = 5          # Conv1d kernel_size
STRIDE = 4     # Conv1d stride
L_IN = 341     # 341 -> 85 -> 21 -> 5 -> 1, so the flatten is (N, 8)
D_IN = 2 * L_IN                                   # 682 (kept unpadded)

# Lane-padded (multiple-of-128) widths of every layer output.
D1, D2, D3, D4, DH = 768, 256, 128, 128, 128      # real: 680, 168, 40, 8, 30
# Bias-slab layout: [b1 | b2 | b3 | b4 | bf1 | wf2_row]
B1_LO, B1_HI = 0, D1
B2_LO, B2_HI = B1_HI, B1_HI + D2
B3_LO, B3_HI = B2_HI, B2_HI + D3
B4_LO, B4_HI = B3_HI, B3_HI + D4
F1_LO, F1_HI = B4_HI, B4_HI + DH
W2_LO, W2_HI = F1_HI, F1_HI + 128
BIAS_W = W2_HI                                    # 1536


# ------------------------------ fused kernel --------------------------------

def _pdos_fused_kernel(x_ref, m1_ref, m2_ref, wslab_ref, bias_ref, scal_ref,
                       o_ref):
    # x_ref     : (TM, 682) f32        batch tile
    # m1_ref    : (682, 768) bf16      conv1 as dense matmul
    # m2_ref    : (768, 256) bf16      conv2
    # wslab_ref : (256, 384) bf16      [m3 | m4 | wf1], each 128 cols
    # bias_ref  : (1, 1536)  f32       [b1|b2|b3|b4|bf1|wf2_row]
    # scal_ref  : (8,)       f32 SMEM  [a1,a2,a3,a4,a_fc,b_fc2,0,0]
    # o_ref     : (TM, 1)    f32
    bf16, f32 = jnp.bfloat16, jnp.float32

    def prelu(y, a):
        return jnp.where(y > 0.0, y, a * y)

    # conv1: (TM,682) @ (682,768)
    h = jnp.dot(x_ref[...].astype(bf16), m1_ref[...], preferred_element_type=f32)
    h = prelu(h + bias_ref[:, B1_LO:B1_HI], scal_ref[0])
    # conv2: (TM,768) @ (768,256)
    h = jnp.dot(h.astype(bf16), m2_ref[...], preferred_element_type=f32)
    h = prelu(h + bias_ref[:, B2_LO:B2_HI], scal_ref[1])
    # conv3: (TM,256) @ (256,128)
    h = jnp.dot(h.astype(bf16), wslab_ref[:, 0:128], preferred_element_type=f32)
    h = prelu(h + bias_ref[:, B3_LO:B3_HI], scal_ref[2])
    # conv4: (TM,128) @ (128,128)
    h = jnp.dot(h.astype(bf16), wslab_ref[0:128, 128:256],
                preferred_element_type=f32)
    h = prelu(h + bias_ref[:, B4_LO:B4_HI], scal_ref[3])
    # fc1 (8->30 padded to 128->128): (TM,128) @ (128,128)
    h = jnp.dot(h.astype(bf16), wslab_ref[0:128, 256:384],
                preferred_element_type=f32)
    h = prelu(h + bias_ref[:, F1_LO:F1_HI], scal_ref[4])
    # fc2 (30->1): VPU broadcast-multiply + lane reduce (no MXU pass).
    o_ref[...] = (jnp.sum(h * bias_ref[:, W2_LO:W2_HI], axis=-1, keepdims=True)
                  + scal_ref[5])


# ------------------------- init-time weight packing --------------------------

def _conv_as_dense(w, l_in):
    """Fold Conv1d(k=5, stride=4) weights (C_out, C_in, K) into a dense
    (C_in*l_in, C_out*l_out) matrix so that
        y_flat[n, o*l_out + j] = x_flat[n, :] @ M[:, o*l_out + j]
    with x_flat[n, c*l_in + i] = x[n, c, i]."""
    c_out, c_in, k = w.shape
    l_out = (l_in - k) // STRIDE + 1
    i = jnp.arange(l_in)
    j = jnp.arange(l_out)
    kk = i[:, None] - STRIDE * j[None, :]                  # (l_in, l_out)
    valid = (kk >= 0) & (kk < k)
    kk = jnp.clip(kk, 0, k - 1)
    wg = w[:, :, kk]                                       # (C_out, C_in, l_in, l_out)
    wg = jnp.where(valid[None, None], wg, 0.0)
    m = jnp.transpose(wg, (1, 2, 0, 3)).reshape(c_in * l_in, c_out * l_out)
    return m, l_out


def _pad_to(a, shape):
    return jnp.pad(a, [(0, s - d) for d, s in zip(a.shape, shape)])


def pack_params(params):
    """One-time packing: dense lane-padded conv matrices (bf16), one bias/wf2
    slab (f32), one small-weight slab (bf16), one SMEM scalar vector."""
    pad_in = (D_IN, D1, D2, D3)        # input width per conv layer (layer-1 unpadded)
    pad_out = (D1, D2, D3, D4)
    mats, biases, slopes = [], [], []
    l_in = L_IN
    for idx, (w, b, a) in enumerate(params["convs"]):
        c_out = w.shape[0]
        m, l_out = _conv_as_dense(w, l_in)
        bias = jnp.broadcast_to(b[:, None], (c_out, l_out)).reshape(c_out * l_out)
        mats.append(_pad_to(m, (pad_in[idx], pad_out[idx])))
        biases.append(_pad_to(bias, (pad_out[idx],)))
        slopes.append(jnp.reshape(a, ()))
        l_in = l_out

    w1, b1, a1, w2, b2 = params["fc"]
    wf1 = _pad_to(w1.T, (128, DH))                     # (8,30) -> (128,128)
    bf1 = _pad_to(b1, (DH,))
    wf2_row = _pad_to(w2.reshape(-1), (128,))          # (30,) -> (128,)
    slopes.append(jnp.reshape(a1, ()))

    m1 = mats[0].astype(jnp.bfloat16)                  # (682, 768)
    m2 = mats[1].astype(jnp.bfloat16)                  # (768, 256)
    wslab = jnp.concatenate(                           # (256, 384) = m3|m4|wf1
        [mats[2], _pad_to(mats[3], (D2, D4)), _pad_to(wf1, (D2, DH))],
        axis=1).astype(jnp.bfloat16)
    bias_slab = jnp.concatenate(
        biases + [bf1, wf2_row]).reshape(1, BIAS_W).astype(jnp.float32)
    zero = jnp.zeros((), jnp.float32)
    scal = jnp.stack(slopes + [jnp.reshape(b2, ()), zero, zero]).astype(jnp.float32)
    return (m1, m2, wslab, bias_slab, scal)


# --------------------------------- forward -----------------------------------

def _round_up(x, m):
    return (x + m - 1) // m * m


@functools.partial(jax.jit, static_argnames=("tm",))
def pdos_forward(packed, x, tm=512):
    """x: (N, 2, 341) f32 -> (N, 1) f32.  Single fused pallas_call with a
    batch grid; weights stay VMEM-resident across grid steps.
    tm: batch tile (multiple of 8).  512 is safe everywhere; v6e can use more."""
    m1, m2, wslab, bias_slab, scal = packed
    n = x.shape[0]
    x2d = x.reshape(n, D_IN)
    tm_eff = min(tm, _round_up(n, 8))
    n_pad = _round_up(n, tm_eff)
    if n_pad != n:
        x2d = jnp.pad(x2d, ((0, n_pad - n), (0, 0)))
    grid = (n_pad // tm_eff,)

    out = pl.pallas_call(
        _pdos_fused_kernel,
        out_shape=jax.ShapeDtypeStruct((n_pad, 1), jnp.float32),
        grid=grid,
        in_specs=[
            pl.BlockSpec((tm_eff, D_IN), lambda i: (i, 0)),       # x tile
            pl.BlockSpec((D_IN, D1), lambda i: (0, 0)),           # m1 (resident)
            pl.BlockSpec((D1, D2), lambda i: (0, 0)),             # m2 (resident)
            pl.BlockSpec((D2, 3 * 128), lambda i: (0, 0)),        # m3|m4|wf1
            pl.BlockSpec((1, BIAS_W), lambda i: (0, 0)),          # bias slab
            pl.BlockSpec(memory_space=pltpu.MemorySpace.SMEM),    # scalars
        ],
        out_specs=pl.BlockSpec((tm_eff, 1), lambda i: (i, 0)),
        compiler_params=pltpu.CompilerParams(
            dimension_semantics=("parallel",),        # megacore on v7x
            vmem_limit_bytes=32 * 1024 * 1024,        # raise v5e's 16 MiB default
        ),
    )(x2d, m1, m2, wslab, bias_slab, scal)
    return out[:n]


# ------------------------- parameter initialization --------------------------

def init_params(key):
    def uniform(k, shape, fan_in):
        bound = 1.0 / jnp.sqrt(float(fan_in))
        return jax.random.uniform(k, shape, jnp.float32, -bound, bound)

    chans = [(2, 8), (8, 8), (8, 8), (8, 8)]
    convs = []
    for (cin, cout) in chans:
        key, kw, kb = jax.random.split(key, 3)
        w = uniform(kw, (cout, cin, K), cin * K)
        b = uniform(kb, (cout,), cin * K)
        a = jnp.asarray(0.25, jnp.float32)            # PReLU default init
        convs.append((w, b, a))

    key, k1, k2, k3, k4 = jax.random.split(key, 5)
    w1 = uniform(k1, (30, 8), 8)
    b1 = uniform(k2, (30,), 8)
    a1 = jnp.asarray(0.25, jnp.float32)
    w2 = uniform(k3, (1, 30), 30)
    b2 = uniform(k4, (1,), 30)
    return {"convs": convs, "fc": (w1, b1, a1, w2, b2)}


# -------------------------------- reference ----------------------------------

def pdos_forward_ref(params, x):
    out = x
    for (w, b, a) in params["convs"]:
        n, c_in, l = out.shape
        c_out = w.shape[0]
        l_out = (l - K) // STRIDE + 1
        idx = STRIDE * jnp.arange(l_out)[None, :] + jnp.arange(K)[:, None]
        patches = out[:, :, idx].reshape(n, c_in * K, l_out)
        y = jnp.einsum("of,nfl->nol", w.reshape(c_out, c_in * K), patches)
        y = y + b.reshape(1, c_out, 1)
        out = jnp.where(y > 0, y, a * y)
    n, c, l = out.shape
    out = out.reshape(n, c * l)
    w1, b1, a1, w2, b2 = params["fc"]
    h = out @ w1.T + b1
    h = jnp.where(h > 0, h, a1 * h)
    return h @ w2.T + b2


# ----------------------------------- main -------------------------------------

if __name__ == "__main__":
    key = jax.random.PRNGKey(0)
    key, kp, kx = jax.random.split(key, 3)
    params = init_params(kp)
    packed = pack_params(params)                      # one-time packing

    # 341 -> 85 -> 21 -> 5 -> 1 after four stride-4, k=5 convs, so the
    # flattened conv output has exactly 8 features for the Linear(8, 30).
    x = jax.random.normal(kx, (2, 2, 341), jnp.float32)

    y = pdos_forward(packed, x)
    y = jax.block_until_ready(y)
    assert y.shape == (2, 1) and y.dtype == jnp.float32

    y_ref = pdos_forward_ref(params, x)
    # bf16 weights/activations with f32 accumulation: relaxed tolerance.
    assert jnp.allclose(y, y_ref, atol=3e-2, rtol=3e-2), (y, y_ref)

    print("KERNEL_OK")
</pallas_src>

<mosaic_0001>
module attributes {stable_mosaic.version = 11 : i64} {
  func.func @_pdos_fused_kernel(%arg0: i32, %arg1: memref<8x682xf32, #tpu.memory_space<vmem>>, %arg2: memref<682x768xbf16, #tpu.memory_space<vmem>>, %arg3: memref<768x256xbf16, #tpu.memory_space<vmem>>, %arg4: memref<256x384xbf16, #tpu.memory_space<vmem>>, %arg5: memref<1x1536xf32, #tpu.memory_space<vmem>>, %arg6: memref<8xf32, #tpu.memory_space<smem>>, %arg7: memref<8x1xf32, #tpu.memory_space<vmem>>) attributes {dimension_semantics = [#tpu.dimension_semantics<parallel>], iteration_bounds = array<i64: 1>, scalar_prefetch = 0 : i64, scratch_operands = 0 : i64, tpu.core_type = #tpu.core_type<tc>, window_params = [{transform_indices = @transform_0, window_bounds = array<i64: 8, 682>}, {pipeline_mode = #tpu.pipeline_mode<synchronous>, transform_indices = @transform_1, window_bounds = array<i64: 682, 768>}, {pipeline_mode = #tpu.pipeline_mode<synchronous>, transform_indices = @transform_2, window_bounds = array<i64: 768, 256>}, {pipeline_mode = #tpu.pipeline_mode<synchronous>, transform_indices = @transform_3, window_bounds = array<i64: 256, 384>}, {pipeline_mode = #tpu.pipeline_mode<synchronous>, transform_indices = @transform_4, window_bounds = array<i64: 1, 1536>}, {transform_indices = @transform_5, window_bounds = array<i64: 8>}, {transform_indices = @transform_6, window_bounds = array<i64: 8, 1>}]} {
    %c0 = arith.constant 0 : index
    %c0_0 = arith.constant 0 : index
    %0 = vector.load %arg1[%c0, %c0_0] : memref<8x682xf32, #tpu.memory_space<vmem>>, vector<8x682xf32>
    %1 = arith.truncf %0 : vector<8x682xf32> to vector<8x682xbf16>
    %c0_1 = arith.constant 0 : index
    %c0_2 = arith.constant 0 : index
    %2 = vector.load %arg2[%c0_1, %c0_2] : memref<682x768xbf16, #tpu.memory_space<vmem>>, vector<682x768xbf16>
    %cst = arith.constant dense<0.000000e+00> : vector<8x768xf32>
    %3 = tpu.matmul %1, %2, %cst {dimension_numbers = #tpu.dot_dimension_numbers<[1], [0], [0], [1], [0, 0, 1, 1], [], []>} : vector<8x682xbf16>, vector<682x768xbf16>, vector<8x768xf32> -> vector<8x768xf32>
    %c0_3 = arith.constant 0 : index
    %c0_4 = arith.constant 0 : index
    %4 = vector.load %arg5[%c0_3, %c0_4] : memref<1x1536xf32, #tpu.memory_space<vmem>>, vector<1x768xf32>
    %5 = vector.broadcast %4 : vector<1x768xf32> to vector<8x768xf32>
    %6 = arith.addf %3, %5 : vector<8x768xf32>
    %c0_5 = arith.constant 0 : index
    %7 = memref.load %arg6[%c0_5] : memref<8xf32, #tpu.memory_space<smem>>
    %cst_6 = arith.constant 0.000000e+00 : f32
    %8 = vector.broadcast %cst_6 : f32 to vector<8x768xf32>
    %9 = arith.cmpf ogt, %6, %8 : vector<8x768xf32>
    %10 = vector.broadcast %7 : f32 to vector<8x768xf32>
    %11 = arith.mulf %10, %6 : vector<8x768xf32>
    %12 = arith.select %9, %6, %11 : vector<8x768xi1>, vector<8x768xf32>
    %13 = arith.truncf %12 : vector<8x768xf32> to vector<8x768xbf16>
    %c0_7 = arith.constant 0 : index
    %c0_8 = arith.constant 0 : index
    %14 = vector.load %arg3[%c0_7, %c0_8] : memref<768x256xbf16, #tpu.memory_space<vmem>>, vector<768x256xbf16>
    %cst_9 = arith.constant dense<0.000000e+00> : vector<8x256xf32>
    %15 = tpu.matmul %13, %14, %cst_9 {dimension_numbers = #tpu.dot_dimension_numbers<[1], [0], [0], [1], [0, 0, 1, 1], [], []>} : vector<8x768xbf16>, vector<768x256xbf16>, vector<8x256xf32> -> vector<8x256xf32>
    %c0_10 = arith.constant 0 : index
    %c768 = arith.constant 768 : index
    %16 = vector.load %arg5[%c0_10, %c768] : memref<1x1536xf32, #tpu.memory_space<vmem>>, vector<1x256xf32>
    %17 = vector.broadcast %16 : vector<1x256xf32> to vector<8x256xf32>
    %18 = arith.addf %15, %17 : vector<8x256xf32>
    %c1 = arith.constant 1 : index
    %19 = memref.load %arg6[%c1] : memref<8xf32, #tpu.memory_space<smem>>
    %cst_11 = arith.constant 0.000000e+00 : f32
    %20 = vector.broadcast %cst_11 : f32 to vector<8x256xf32>
    %21 = arith.cmpf ogt, %18, %20 : vector<8x256xf32>
    %22 = vector.broadcast %19 : f32 to vector<8x256xf32>
    %23 = arith.mulf %22, %18 : vector<8x256xf32>
    %24 = arith.select %21, %18, %23 : vector<8x256xi1>, vector<8x256xf32>
    %25 = arith.truncf %24 : vector<8x256xf32> to vector<8x256xbf16>
    %c0_12 = arith.constant 0 : index
    %c0_13 = arith.constant 0 : index
    %26 = vector.load %arg4[%c0_12, %c0_13] : memref<256x384xbf16, #tpu.memory_space<vmem>>, vector<256x128xbf16>
    %cst_14 = arith.constant dense<0.000000e+00> : vector<8x128xf32>
    %27 = tpu.matmul %25, %26, %cst_14 {dimension_numbers = #tpu.dot_dimension_numbers<[1], [0], [0], [1], [0, 0, 1, 1], [], []>} : vector<8x256xbf16>, vector<256x128xbf16>, vector<8x128xf32> -> vector<8x128xf32>
    %c0_15 = arith.constant 0 : index
    %c1024 = arith.constant 1024 : index
    %28 = vector.load %arg5[%c0_15, %c1024] : memref<1x1536xf32, #tpu.memory_space<vmem>>, vector<1x128xf32>
    %29 = vector.broadcast %28 : vector<1x128xf32> to vector<8x128xf32>
    %30 = arith.addf %27, %29 : vector<8x128xf32>
    %c2 = arith.constant 2 : index
    %31 = memref.load %arg6[%c2] : memref<8xf32, #tpu.memory_space<smem>>
    %cst_16 = arith.constant 0.000000e+00 : f32
    %32 = vector.broadcast %cst_16 : f32 to vector<8x128xf32>
    %33 = arith.cmpf ogt, %30, %32 : vector<8x128xf32>
    %34 = vector.broadcast %31 : f32 to vector<8x128xf32>
    %35 = arith.mulf %34, %30 : vector<8x128xf32>
    %36 = arith.select %33, %30, %35 : vector<8x128xi1>, vector<8x128xf32>
    %37 = arith.truncf %36 : vector<8x128xf32> to vector<8x128xbf16>
    %c0_17 = arith.constant 0 : index
    %c128 = arith.constant 128 : index
    %38 = vector.load %arg4[%c0_17, %c128] : memref<256x384xbf16, #tpu.memory_space<vmem>>, vector<128x128xbf16>
    %cst_18 = arith.constant dense<0.000000e+00> : vector<8x128xf32>
    %39 = tpu.matmul %37, %38, %cst_18 {dimension_numbers = #tpu.dot_dimension_numbers<[1], [0], [0], [1], [0, 0, 1, 1], [], []>} : vector<8x128xbf16>, vector<128x128xbf16>, vector<8x128xf32> -> vector<8x128xf32>
    %c0_19 = arith.constant 0 : index
    %c1152 = arith.constant 1152 : index
    %40 = vector.load %arg5[%c0_19, %c1152] : memref<1x1536xf32, #tpu.memory_space<vmem>>, vector<1x128xf32>
    %41 = vector.broadcast %40 : vector<1x128xf32> to vector<8x128xf32>
    %42 = arith.addf %39, %41 : vector<8x128xf32>
    %c3 = arith.constant 3 : index
    %43 = memref.load %arg6[%c3] : memref<8xf32, #tpu.memory_space<smem>>
    %cst_20 = arith.constant 0.000000e+00 : f32
    %44 = vector.broadcast %cst_20 : f32 to vector<8x128xf32>
    %45 = arith.cmpf ogt, %42, %44 : vector<8x128xf32>
    %46 = vector.broadcast %43 : f32 to vector<8x128xf32>
    %47 = arith.mulf %46, %42 : vector<8x128xf32>
    %48 = arith.select %45, %42, %47 : vector<8x128xi1>, vector<8x128xf32>
    %49 = arith.truncf %48 : vector<8x128xf32> to vector<8x128xbf16>
    %c0_21 = arith.constant 0 : index
    %c256 = arith.constant 256 : index
    %50 = vector.load %arg4[%c0_21, %c256] : memref<256x384xbf16, #tpu.memory_space<vmem>>, vector<128x128xbf16>
    %cst_22 = arith.constant dense<0.000000e+00> : vector<8x128xf32>
    %51 = tpu.matmul %49, %50, %cst_22 {dimension_numbers = #tpu.dot_dimension_numbers<[1], [0], [0], [1], [0, 0, 1, 1], [], []>} : vector<8x128xbf16>, vector<128x128xbf16>, vector<8x128xf32> -> vector<8x128xf32>
    %c0_23 = arith.constant 0 : index
    %c1280 = arith.constant 1280 : index
    %52 = vector.load %arg5[%c0_23, %c1280] : memref<1x1536xf32, #tpu.memory_space<vmem>>, vector<1x128xf32>
    %53 = vector.broadcast %52 : vector<1x128xf32> to vector<8x128xf32>
    %54 = arith.addf %51, %53 : vector<8x128xf32>
    %c4 = arith.constant 4 : index
    %55 = memref.load %arg6[%c4] : memref<8xf32, #tpu.memory_space<smem>>
    %cst_24 = arith.constant 0.000000e+00 : f32
    %56 = vector.broadcast %cst_24 : f32 to vector<8x128xf32>
    %57 = arith.cmpf ogt, %54, %56 : vector<8x128xf32>
    %58 = vector.broadcast %55 : f32 to vector<8x128xf32>
    %59 = arith.mulf %58, %54 : vector<8x128xf32>
    %60 = arith.select %57, %54, %59 : vector<8x128xi1>, vector<8x128xf32>
    %c0_25 = arith.constant 0 : index
    %c1408 = arith.constant 1408 : index
    %61 = vector.load %arg5[%c0_25, %c1408] : memref<1x1536xf32, #tpu.memory_space<vmem>>, vector<1x128xf32>
    %62 = vector.broadcast %61 : vector<1x128xf32> to vector<8x128xf32>
    %63 = arith.mulf %60, %62 : vector<8x128xf32>
    %cst_26 = arith.constant dense<0.000000e+00> : vector<8xf32>
    %64 = vector.multi_reduction <add>, %63, %cst_26 [1] : vector<8x128xf32> to vector<8xf32>
    %65 = vector.shape_cast %64 : vector<8xf32> to vector<8x1xf32>
    %c5 = arith.constant 5 : index
    %66 = memref.load %arg6[%c5] : memref<8xf32, #tpu.memory_space<smem>>
    %67 = vector.broadcast %66 : f32 to vector<8x1xf32>
    %68 = arith.addf %65, %67 : vector<8x1xf32>
    %c0_27 = arith.constant 0 : index
    %c0_28 = arith.constant 0 : index
    %69 = vector.load %arg7[%c0_27, %c0_28] : memref<8x1xf32, #tpu.memory_space<vmem>>, vector<8x1xf32>
    tpu.vector_store %arg7[%c0_27, %c0_28], %68 {strides = array<i32>} : memref<8x1xf32, #tpu.memory_space<vmem>>, vector<8x1xf32>,
    return
  }
  func.func @transform_0(%arg0: i32) -> (i32, i32) {
    %c0_i32 = arith.constant 0 : i32
    %c0_i32_0 = arith.constant 0 : i32
    return %arg0, %c0_i32 : i32, i32
  }
  func.func @transform_1(%arg0: i32) -> (i32, i32) {
    %c0_i32 = arith.constant 0 : i32
    %c0_i32_0 = arith.constant 0 : i32
    %c0_i32_1 = arith.constant 0 : i32
    return %c0_i32, %c0_i32_0 : i32, i32
  }
  func.func @transform_2(%arg0: i32) -> (i32, i32) {
    %c0_i32 = arith.constant 0 : i32
    %c0_i32_0 = arith.constant 0 : i32
    %c0_i32_1 = arith.constant 0 : i32
    return %c0_i32, %c0_i32_0 : i32, i32
  }
  func.func @transform_3(%arg0: i32) -> (i32, i32) {
    %c0_i32 = arith.constant 0 : i32
    %c0_i32_0 = arith.constant 0 : i32
    %c0_i32_1 = arith.constant 0 : i32
    return %c0_i32, %c0_i32_0 : i32, i32
  }
  func.func @transform_4(%arg0: i32) -> (i32, i32) {
    %c0_i32 = arith.constant 0 : i32
    %c0_i32_0 = arith.constant 0 : i32
    %c0_i32_1 = arith.constant 0 : i32
    return %c0_i32, %c0_i32_0 : i32, i32
  }
  func.func @transform_5(%arg0: i32) -> i32 {
    %c0_i32 = arith.constant 0 : i32
    %c0_i32_0 = arith.constant 0 : i32
    return %c0_i32 : i32
  }
  func.func @transform_6(%arg0: i32) -> (i32, i32) {
    %c0_i32 = arith.constant 0 : i32
    %c0_i32_0 = arith.constant 0 : i32
    return %arg0, %c0_i32 : i32, i32
  }
}

</mosaic_0001>

<bundles_post_ra>
// kernel: pdos_forward.1
= control target key start
LH: loop header
LB: loop body
LE: loop exit
PB: predicated region body
PF: predicated region fallthrough
CT: control target
= control target key end

     0   :  { %11 = vsyncpa [#allocation3], 0  ;;  %s4674_s0 = inlined_call_operand.vmem [shape: f32[8,682], index: 0, kind: input, shape index: {}]   ;;  %s4675_s1 = inlined_call_operand.hbm [shape: bf16[682,768], index: 1, kind: input, shape index: {}]   ;;  %s4676_s2 = inlined_call_operand.hbm [shape: bf16[768,256], index: 2, kind: input, shape index: {}]   ;;  %s4677_s3 = inlined_call_operand.hbm [shape: bf16[256,384], index: 3, kind: input, shape index: {}]   ;;  %s4678_s4 = inlined_call_operand.hbm [shape: f32[1,1536], index: 4, kind: input, shape index: {}]   ;;  %s4679_s5 = inlined_call_operand.hbm [shape: f32[8], index: 5, kind: input, shape index: {}]   ;;  %s4680_s6 = inlined_call_operand.vmem [shape: f32[8,1], index: 6, kind: output, shape index: {}]  }
   0x1   :  { %12 = vsyncpa [#allocation6], 0 }
   0x2   :  { %13 = vsyncpa [#allocation9], 0 }
   0x3   :  { %14 = vsyncpa [#allocation4], 0  ;;  %s4453_s21 = smov [#allocation5]   ;;  %s4347_s25 = scalar_lea.hbm %s4676_s2, 12288 }
   0x4   :  { %s34_s22 = sshll.u32 %s4453_s21, 4  ;;  %p4348_p0 = scmp.ne.s32.totalorder %s4676_s2, %s4347_s25  ;;  %s35_s22 = int_to_ptr.vmem [resolvable:$true] %s34_s22 }
   0x5   :  { %p4351_p1 = scmp.lt.u32.totalorder %s4347_s25, %s4676_s2 }
   0x7   :  { %p4353_p2 = pnand %p4351_p1, %p4348_p0 }
   0x9   :  { %4356 = shalt.err (!%p4353_p2)
}
   0xa   :  { %s4357_s30 = scalar_lea.vmem %s35_s22, 12288  ;;  %p4362_p4 = scmp.lt.s32.totalorder %s35_s22, %s35_s22 }
   0xb   :  { %p4358_p3 = scmp.ne.s32.totalorder %s35_s22, %s4357_s30  ;;  %p4363_p5 = scmp.lt.s32.totalorder %s4357_s30, %s4357_s30 }
   0xd   :  { %p4364_p6 = por %p4363_p5, %p4362_p4 }
   0xf   :  { %p4365_p7 = pnand %p4364_p6, %p4358_p3 }
  0x11   :  { %4368 = shalt.err (!%p4365_p7)
}
  0x12   :  { %s4454_s7 = smov 128   ;;  %s4455_s8 = smov 8  }
  0x13   :  { %40 = dma.hbm_to_vmem [thread:$0]  %s4676_s2, 12288, %s35_s22, [#allocation6], %s4454_s7, %s4454_s7, %s4455_s8  }
  0x14   :  { %s4456_s11 = smov [#allocation2]   ;;  %s4369_s15 = scalar_lea.hbm %s4675_s1, 33024 }
  0x15   :  { %s22_s12 = sshll.u32 %s4456_s11, 4  ;;  %p4370_p8 = scmp.ne.s32.totalorder %s4675_s1, %s4369_s15  ;;  %s23_s12 = int_to_ptr.vmem [resolvable:$true] %s22_s12 }
  0x16   :  { %p4373_p9 = scmp.lt.u32.totalorder %s4369_s15, %s4675_s1 }
  0x18   :  { %p4375_p10 = pnand %p4373_p9, %p4370_p8 }
  0x1a   :  { %4378 = shalt.err (!%p4375_p10)
}
  0x1b   :  { %s4379_s20 = scalar_lea.vmem %s23_s12, 33024  ;;  %p4384_p12 = scmp.lt.s32.totalorder %s23_s12, %s23_s12 }
  0x1c   :  { %p4380_p11 = scmp.ne.s32.totalorder %s23_s12, %s4379_s20  ;;  %p4385_p13 = scmp.lt.s32.totalorder %s4379_s20, %s4379_s20 }
  0x1e   :  { %p4386_p0 = por %p4385_p13, %p4384_p12 }
  0x20   :  { %p4387_p1 = pnand %p4386_p0, %p4380_p11 }
  0x22   :  { %4390 = shalt.err (!%p4387_p1)
}
  0x23   :  { %s4457_s2 = smov 384   ;;  %s4458_s21 = smov 24  }
  0x24   :  { %28 = dma.hbm_to_vmem [thread:$0]  %s4675_s1, 33024, %s23_s12, [#allocation3], %s4457_s2, %s4457_s2, %s4458_s21  }
  0x25   :  { %s4459_s24 = smov [#allocation7]   ;;  %s4391_s28 = scalar_lea.hbm %s4677_s3, 6144 }
  0x26   :  { %s46_s25 = sshll.u32 %s4459_s24, 4  ;;  %p4392_p2 = scmp.ne.s32.totalorder %s4677_s3, %s4391_s28  ;;  %s47_s25 = int_to_ptr.vmem [resolvable:$true] %s46_s25 }
  0x27   :  { %p4395_p3 = scmp.lt.u32.totalorder %s4391_s28, %s4677_s3 }
  0x29   :  { %p4397_p4 = pnand %p4395_p3, %p4392_p2 }
  0x2b   :  { %4400 = shalt.err (!%p4397_p4)
}
  0x2c   :  { %s4401_s9 = scalar_lea.vmem %s47_s25, 6144  ;;  %p4406_p6 = scmp.lt.s32.totalorder %s47_s25, %s47_s25 }
  0x2d   :  { %p4402_p5 = scmp.ne.s32.totalorder %s47_s25, %s4401_s9  ;;  %p4407_p7 = scmp.lt.s32.totalorder %s4401_s9, %s4401_s9 }
  0x2f   :  { %p4408_p8 = por %p4407_p7, %p4406_p6 }
  0x31   :  { %p4409_p9 = pnand %p4408_p8, %p4402_p5 }
  0x33   :  { %4412 = shalt.err (!%p4409_p9)
}
  0x34   :  { %s4460_s1 = smov 192   ;;  %s4461_s10 = smov 12  }
  0x35   :  { %52 = dma.hbm_to_vmem [thread:$0]  %s4677_s3, 6144, %s47_s25, [#allocation6], %s4460_s1, %s4460_s1, %s4461_s10  }
  0x36   :  { %s4462_s13 = smov [#allocation8]   ;;  %s4413_s17 = scalar_lea.hbm %s4678_s4, 192 }
  0x37   :  { %s59_s14 = sshll.u32 %s4462_s13, 4  ;;  %p4414_p10 = scmp.ne.s32.totalorder %s4678_s4, %s4413_s17  ;;  %s60_s14 = int_to_ptr.vmem [resolvable:$true] %s59_s14 }
  0x38   :  { %p4417_p11 = scmp.lt.u32.totalorder %s4413_s17, %s4678_s4 }
  0x3a   :  { %p4419_p12 = pnand %p4417_p11, %p4414_p10 }
  0x3c   :  { %4422 = shalt.err (!%p4419_p12)
}
  0x3d   :  { %s4423_s21 = scalar_lea.vmem %s60_s14, 192  ;;  %p4428_p0 = scmp.lt.s32.totalorder %s60_s14, %s60_s14 }
  0x3e   :  { %p4424_p13 = scmp.ne.s32.totalorder %s60_s14, %s4423_s21  ;;  %p4429_p1 = scmp.lt.s32.totalorder %s4423_s21, %s4423_s21 }
  0x40   :  { %p4430_p2 = por %p4429_p1, %p4428_p0 }
  0x42   :  { %p4431_p3 = pnand %p4430_p2, %p4424_p13 }
  0x44   :  { %4434 = shalt.err (!%p4431_p3)
}
  0x45   :  { %62 = dma.hbm_to_vmem [thread:$0]  %s4678_s4, 192, %s60_s14, [#allocation9]  }
  0x46   :  { %s4435_s25 = scalar_lea.hbm %s4679_s5, 16 }
  0x47   :  { %p4436_p4 = scmp.ne.s32.totalorder %s4679_s5, %s4435_s25  ;;  %p4439_p5 = scmp.lt.u32.totalorder %s4435_s25, %s4679_s5 }
  0x49   :  { %p4441_p6 = pnand %p4439_p5, %p4436_p4 }
  0x4b   :  { %4444 = shalt.err (!%p4441_p6)
}
  0x4c   :  { %s4463_s30 = smov [#allocation10]  }
  0x4d   :  { %70 = dma.hbm_to_smem %s4679_s5, 16, %s4463_s30, [#allocation4]  }
  0x4e   :  { %4445 = dma.done.wait [#allocation3], 33024  }
  0x4f   :  { %4446 = vsyncadd [#allocation3], 4294934272 }
  0x50   :  { %4447 = dma.done.wait [#allocation6], 18432  }
  0x51   :  { %4448 = vsyncadd [#allocation6], 4294948864 }
  0x52   :  { %4449 = dma.done.wait [#allocation9], 192  }
  0x53   :  { %4450 = vsyncadd [#allocation9], 4294967104 }
  0x54   :  { %4451 = dma.done.wait [#allocation4], 16  }
  0x55   :  { %4452 = vsyncadd [#allocation4], 4294967280 }
  0x56   :  { %86 = sfence }
  0x57   :  { %v3784_v0 = vld [vmem:[#allocation2 + $0x4] ss:$24 sps:$4 sm:$0xff]   ;;  %v3788_v2 = vld [vmem:[#allocation2] ss:$24 sps:$4 sm:$0xff]   ;;  %v3790_v4 = vld [vmem:[#allocation2 + $0x34] ss:$24 sps:$4 sm:$0xff]  }
  0x58   :  { %v3786_v1 = vld [vmem:[#allocation2 + $0xc] ss:$24 sps:$4 sm:$0xff]   ;;  %1697 = vmatprep.subr.bf16.mxu0 %v3784_v0  ;;  %v3789_v3 = vld [vmem:[#allocation2 + $0x8] ss:$24 sps:$4 sm:$0xff]   ;;  %v3792_v5 = vld [vmem:[#allocation2 + $0x3c] ss:$24 sps:$4 sm:$0xff]  }
  0x59   :  { %1820 = vmatprep.subr.bf16.mxu1 %v3786_v1  ;;  %1698 = vmatpush1.bf16.msra.mxu0 %v3788_v2  ;;  %v3794_v6 = vld [vmem:[#allocation2 + $0x30] ss:$24 sps:$4 sm:$0xff]   ;;  %v3796_v8 = vld [vmem:[#allocation2 + $0x64] ss:$24 sps:$4 sm:$0xff]   ;;  %v3800_v10 = vld [vmem:[#allocation2 + $0x60] ss:$24 sps:$4 sm:$0xff]  }
  0x5a   :  { %1821 = vmatpush1.bf16.msra.mxu1 %v3789_v3  ;;  %1699 = vmatprep.subr.bf16.mxu0 %v3790_v4  ;;  %v3795_v7 = vld [vmem:[#allocation2 + $0x38] ss:$24 sps:$4 sm:$0xff]   ;;  %v3798_v9 = vld [vmem:[#allocation2 + $0x6c] ss:$24 sps:$4 sm:$0xff]   ;;  %v3801_v11 = vld [vmem:[#allocation2 + $0x68] ss:$24 sps:$4 sm:$0xff]  }
  0x5b   :  { %1822 = vmatprep.subr.bf16.mxu1 %v3792_v5  ;;  %v3802_v12 = vld [vmem:[#allocation2 + $0x94] ss:$24 sps:$4 sm:$0xff]   ;;  %v3806_v14 = vld [vmem:[#allocation2 + $0x90] ss:$24 sps:$4 sm:$0xff]   ;;  %v3808_v16 = vld [vmem:[#allocation2 + $0xc4] ss:$24 sps:$4 sm:$0xff]  }
  0x5c   :  { %v3804_v13 = vld [vmem:[#allocation2 + $0x9c] ss:$24 sps:$4 sm:$0xff]   ;;  %v3807_v15 = vld [vmem:[#allocation2 + $0x98] ss:$24 sps:$4 sm:$0xff]   ;;  %v3810_v17 = vld [vmem:[#allocation2 + $0xcc] ss:$24 sps:$4 sm:$0xff]  }
  0x5d   :  { %1700 = vmatpush1.bf16.msra.mxu0 %v3794_v6  ;;  %v3812_v18 = vld [vmem:[#allocation2 + $0xc0] ss:$24 sps:$4 sm:$0xff]   ;;  %v3814_v20 = vld [vmem:[#allocation2 + $0xf4] ss:$24 sps:$4 sm:$0xff]   ;;  %v3818_v22 = vld [vmem:[#allocation2 + $0xf0] ss:$24 sps:$4 sm:$0xff]  }
  0x5e   :  { %1823 = vmatpush1.bf16.msra.mxu1 %v3795_v7  ;;  %1701 = vmatprep.subr.bf16.mxu0 %v3796_v8  ;;  %v3813_v19 = vld [vmem:[#allocation2 + $0xc8] ss:$24 sps:$4 sm:$0xff]   ;;  %v3816_v21 = vld [vmem:[#allocation2 + $0xfc] ss:$24 sps:$4 sm:$0xff]   ;;  %v3819_v23 = vld [vmem:[#allocation2 + $0xf8] ss:$24 sps:$4 sm:$0xff]  }
  0x5f   :  { %1824 = vmatprep.subr.bf16.mxu1 %v3798_v9  ;;  %v3820_v24 = vld [vmem:[#allocation2 + $0x124] ss:$24 sps:$4 sm:$0xff]   ;;  %v3824_v26 = vld [vmem:[#allocation2 + $0x120] ss:$24 sps:$4 sm:$0xff]   ;;  %v3826_v28 = vld [vmem:[#allocation2 + $0x154] ss:$24 sps:$4 sm:$0xff]  }
  0x60   :  { %v3822_v25 = vld [vmem:[#allocation2 + $0x12c] ss:$24 sps:$4 sm:$0xff]   ;;  %v3825_v27 = vld [vmem:[#allocation2 + $0x128] ss:$24 sps:$4 sm:$0xff]   ;;  %v3828_v29 = vld [vmem:[#allocation2 + $0x15c] ss:$24 sps:$4 sm:$0xff]  }
  0x61   :  { %1702 = vmatpush1.bf16.msra.mxu0 %v3800_v10  ;;  %v3830_v30 = vld [vmem:[#allocation2 + $0x150] ss:$24 sps:$4 sm:$0xff]   ;;  %v3832_v32 = vld [vmem:[#allocation2 + $0x184] ss:$24 sps:$4 sm:$0xff]   ;;  %v3836_v34 = vld [vmem:[#allocation2 + $0x180] ss:$24 sps:$4 sm:$0xff]  }
  0x62   :  { %1825 = vmatpush1.bf16.msra.mxu1 %v3801_v11  ;;  %1703 = vmatprep.subr.bf16.mxu0 %v3802_v12  ;;  %v3831_v31 = vld [vmem:[#allocation2 + $0x158] ss:$24 sps:$4 sm:$0xff]   ;;  %v3834_v33 = vld [vmem:[#allocation2 + $0x18c] ss:$24 sps:$4 sm:$0xff]   ;;  %v3837_v35 = vld [vmem:[#allocation2 + $0x188] ss:$24 sps:$4 sm:$0xff]  }
  0x63   :  { %1826 = vmatprep.subr.bf16.mxu1 %v3804_v13  ;;  %v3838_v36 = vld [vmem:[#allocation2 + $0x1b4] ss:$24 sps:$4 sm:$0xff]   ;;  %v3842_v38 = vld [vmem:[#allocation2 + $0x1b0] ss:$24 sps:$4 sm:$0xff]   ;;  %v3844_v40 = vld [vmem:[#allocation2 + $0x1e4] ss:$24 sps:$4 sm:$0xff]  }
  0x64   :  { %v3840_v37 = vld [vmem:[#allocation2 + $0x1bc] ss:$24 sps:$4 sm:$0xff]   ;;  %v3843_v39 = vld [vmem:[#allocation2 + $0x1b8] ss:$24 sps:$4 sm:$0xff]   ;;  %v3846_v41 = vld [vmem:[#allocation2 + $0x1ec] ss:$24 sps:$4 sm:$0xff]  }
  0x65   :  { %1704 = vmatpush1.bf16.msra.mxu0 %v3806_v14  ;;  %v3848_v42 = vld [vmem:[#allocation2 + $0x1e0] ss:$24 sps:$4 sm:$0xff]   ;;  %v3850_v44 = vld [vmem:[#allocation2 + $0x214] ss:$24 sps:$4 sm:$0xff]   ;;  %v3854_v47 = vld [vmem:[#allocation2 + $0x210] ss:$24 sps:$4 sm:$0xff]  }
  0x66   :  { %1827 = vmatpush1.bf16.msra.mxu1 %v3807_v15  ;;  %1705 = vmatprep.subr.bf16.mxu0 %v3808_v16  ;;  %v3849_v43 = vld [vmem:[#allocation2 + $0x1e8] ss:$24 sps:$4 sm:$0xff]   ;;  %v3852_v45 = vld [vmem:[#allocation2 + $0x21c] ss:$24 sps:$4 sm:$0xff]   ;;  %v3855_v49 = vld [vmem:[#allocation2 + $0x218] ss:$24 sps:$4 sm:$0xff]  }
  0x67   :  { %1828 = vmatprep.subr.bf16.mxu1 %v3810_v17  ;;  %v89_v46 = vld [vmem:[%s4674_s0 + $0x8] sm:$0xff]  ;;  %v3856_v50 = vld [vmem:[#allocation2 + $0x244] ss:$24 sps:$4 sm:$0xff]   ;;  %v3860_v52 = vld [vmem:[#allocation2 + $0x240] ss:$24 sps:$4 sm:$0xff]   ;;  %vm1674_vm0 = vcmask 343040  }
  0x68   :  { %v4564_v48 = vpack.c.bf16 %v89_v46, %v89_v46  ;;  %v3858_v51 = vld [vmem:[#allocation2 + $0x24c] ss:$24 sps:$4 sm:$0xff]   ;;  %v3861_v53 = vld [vmem:[#allocation2 + $0x248] ss:$24 sps:$4 sm:$0xff]   ;;  %v3864_v55 = vld [vmem:[#allocation2 + $0x27c] ss:$24 sps:$4 sm:$0xff]  }
  0x69   :  { %1706 = vmatpush1.bf16.msra.mxu0 %v3812_v18  ;;  %v3862_v54 = vld [vmem:[#allocation2 + $0x274] ss:$24 sps:$4 sm:$0xff]   ;;  %v3866_v56 = vld [vmem:[#allocation2 + $0x270] ss:$24 sps:$4 sm:$0xff]   ;;  %v3868_v58 = vld [vmem:[#allocation2 + $0x2a4] ss:$24 sps:$4 sm:$0xff]  }
  0x6a   :  { %1829 = vmatpush1.bf16.msra.mxu1 %v3813_v19  ;;  %1707 = vmatprep.subr.bf16.mxu0 %v3814_v20  ;;  %v3867_v57 = vld [vmem:[#allocation2 + $0x278] ss:$24 sps:$4 sm:$0xff]   ;;  %v3870_v59 = vld [vmem:[#allocation2 + $0x2ac] ss:$24 sps:$4 sm:$0xff]   ;;  %v3873_v61 = vld [vmem:[#allocation2 + $0x2a8] ss:$24 sps:$4 sm:$0xff]  }
  0x6b   :  { %1830 = vmatprep.subr.bf16.mxu1 %v3816_v21  ;;  %1729 = vmatprep.mubr.bf16.mxu0 %v4564_v48  ;;  %v3872_v60 = vld [vmem:[#allocation2 + $0x2a0] ss:$24 sps:$4 sm:$0xff]   ;;  %v3874_v62 = vld [vmem:[#allocation2 + $0x2d4] ss:$24 sps:$4 sm:$0xff]   ;;  %v3878_v0 = vld [vmem:[#allocation2 + $0x2d0] ss:$24 sps:$4 sm:$0xff]  }
  0x6c   :  { %1852 = vmatprep.mubr.bf16.mxu1 %v4564_v48  ;;  %v3876_v63 = vld [vmem:[#allocation2 + $0x2dc] ss:$24 sps:$4 sm:$0xff]   ;;  %v3879_v1 = vld [vmem:[#allocation2 + $0x2d8] ss:$24 sps:$4 sm:$0xff]   ;;  %v88_v2 = vld [vmem:[%s4674_s0] sm:$0xff]  ;;  %vm1678_vm1 = vcmask 1044480  }
  0x6d   :  { %1708 = vmatpush1.bf16.msra.mxu0 %v3818_v22  ;;  %v3882_v3 = vld [vmem:[#allocation2 + $0x304] ss:$24 sps:$4 sm:$0xff]   ;;  %v4571_v5 = vpack.c.bf16 %v88_v2, %v88_v2  ;;  %v3880_v6 = vld [vmem:[#allocation2 + $0x300] ss:$24 sps:$4 sm:$0xff]   ;;  %v3888_v8 = vld [vmem:[#allocation2 + $0x334] ss:$24 sps:$4 sm:$0xff]  }
  0x6e   :  { %1831 = vmatpush1.bf16.msra.mxu1 %v3819_v23  ;;  %1709 = vmatprep.subr.bf16.mxu0 %v3820_v24  ;;  %v3885_v4 = vld [vmem:[#allocation2 + $0x30c] ss:$24 sps:$4 sm:$0xff]   ;;  %v3883_v7 = vld [vmem:[#allocation2 + $0x308] ss:$24 sps:$4 sm:$0xff]   ;;  %v3891_v9 = vld [vmem:[#allocation2 + $0x33c] ss:$24 sps:$4 sm:$0xff]  }
  0x6f   :  { %1832 = vmatprep.subr.bf16.mxu1 %v3822_v25  ;;  %v3886_v10 = vld [vmem:[#allocation2 + $0x330] ss:$24 sps:$4 sm:$0xff]   ;;  %v3894_v12 = vld [vmem:[#allocation2 + $0x364] ss:$24 sps:$4 sm:$0xff]   ;;  %v3892_v14 = vld [vmem:[#allocation2 + $0x360] ss:$24 sps:$4 sm:$0xff]  }
  0x70   :  { %v3889_v11 = vld [vmem:[#allocation2 + $0x338] ss:$24 sps:$4 sm:$0xff]   ;;  %v3897_v13 = vld [vmem:[#allocation2 + $0x36c] ss:$24 sps:$4 sm:$0xff]   ;;  %v3895_v15 = vld [vmem:[#allocation2 + $0x368] ss:$24 sps:$4 sm:$0xff]  }
  0x71   :  { %1710 = vmatpush1.bf16.msra.mxu0 %v3824_v26  ;;  %v3900_v16 = vld [vmem:[#allocation2 + $0x394] ss:$24 sps:$4 sm:$0xff]   ;;  %v3898_v18 = vld [vmem:[#allocation2 + $0x390] ss:$24 sps:$4 sm:$0xff]   ;;  %v3906_v20 = vld [vmem:[#allocation2 + $0x3c4] ss:$24 sps:$4 sm:$0xff]  }
  0x72   :  { %1833 = vmatpush1.bf16.msra.mxu1 %v3825_v27  ;;  %1711 = vmatprep.subr.bf16.mxu0 %v3826_v28  ;;  %v3903_v17 = vld [vmem:[#allocation2 + $0x39c] ss:$24 sps:$4 sm:$0xff]   ;;  %v3901_v19 = vld [vmem:[#allocation2 + $0x398] ss:$24 sps:$4 sm:$0xff]   ;;  %v3909_v21 = vld [vmem:[#allocation2 + $0x3cc] ss:$24 sps:$4 sm:$0xff]  }
  0x73   :  { %1834 = vmatprep.subr.bf16.mxu1 %v3828_v29  ;;  %v3904_v22 = vld [vmem:[#allocation2 + $0x3c0] ss:$24 sps:$4 sm:$0xff]   ;;  %v3912_v24 = vld [vmem:[#allocation2 + $0x3f4] ss:$24 sps:$4 sm:$0xff]   ;;  %v3910_v26 = vld [vmem:[#allocation2 + $0x3f0] ss:$24 sps:$4 sm:$0xff]  }
  0x74   :  { %v3907_v23 = vld [vmem:[#allocation2 + $0x3c8] ss:$24 sps:$4 sm:$0xff]   ;;  %v3915_v25 = vld [vmem:[#allocation2 + $0x3fc] ss:$24 sps:$4 sm:$0xff]   ;;  %v3913_v27 = vld [vmem:[#allocation2 + $0x3f8] ss:$24 sps:$4 sm:$0xff]  }
  0x75   :  { %1712 = vmatpush1.bf16.msra.mxu0 %v3830_v30  ;;  %v3918_v28 = vld [vmem:[#allocation2 + $0x424] ss:$24 sps:$4 sm:$0xff]   ;;  %v3967_v2 = vld [vmem:[#allocation2 + $0x5a8] ss:$24 sps:$4 sm:$0xff]   ;;  %s3610_s18 = sld [smem:[#allocation10 + $0x1]]  ;;  %vm4465_vm10 = vmmov 0  }
  0x76   :  { %1835 = vmatpush1.bf16.msra.mxu1 %v3831_v31  ;;  %1713 = vmatprep.subr.bf16.mxu0 %v3832_v32  ;;  %v3921_v29 = vld [vmem:[#allocation2 + $0x42c] ss:$24 sps:$4 sm:$0xff]   ;;  %v91_v30 = vld [vmem:[%s4674_s0 + $0x18] sm:$0xff]  ;;  %s3628_s19 = sld [smem:[#allocation10 + $0x2]]  ;;  %s3638_s20 = sld [smem:[#allocation10 + $0x3]]  ;;  %vm3240_vm14 = vcmask 7168  }
  0x77   :  { %1836 = vmatprep.subr.bf16.mxu1 %v3834_v33  ;;  %v3916_v31 = vld [vmem:[#allocation2 + $0x420] ss:$24 sps:$4 sm:$0xff]   ;;  %v4578_v32 = vpack.c.bf16 %v91_v30, %v91_v30  ;;  %v3942_v46 = vld [vmem:[#allocation2 + $0x4e4] ss:$24 sps:$4 sm:$0xff]   ;;  %s3648_s2 = sld [smem:[#allocation10 + $0x4]]  ;;  %s3650_s21 = sld [smem:[#allocation10 + $0x5]] }
  0x78   :  { %v3919_v33 = vld [vmem:[#allocation2 + $0x428] ss:$24 sps:$4 sm:$0xff]  }
  0x79   :  { %1714 = vmatpush1.bf16.msra.mxu0 %v3836_v34  ;;  %v3924_v34 = vld [vmem:[#allocation2 + $0x454] ss:$24 sps:$4 sm:$0xff]   ;;  %v4000_v30 = vld [vmem:[#allocation2 + $0x6c0] ss:$24 sps:$4 sm:$0xff]  }
  0x7a   :  { %1837 = vmatpush1.bf16.msra.mxu1 %v3837_v35  ;;  %1715 = vmatprep.subr.bf16.mxu0 %v3838_v36  ;;  %v3927_v35 = vld [vmem:[#allocation2 + $0x45c] ss:$24 sps:$4 sm:$0xff]   ;;  %v3922_v36 = vld [vmem:[#allocation2 + $0x450] ss:$24 sps:$4 sm:$0xff]  }
  0x7b   :  { %1838 = vmatprep.subr.bf16.mxu1 %v3840_v37  ;;  %v3925_v37 = vld [vmem:[#allocation2 + $0x458] ss:$24 sps:$4 sm:$0xff]  }
  0x7d   :  { %1716 = vmatpush1.bf16.msra.mxu0 %v3842_v38  ;;  %v3930_v38 = vld [vmem:[#allocation2 + $0x484] ss:$24 sps:$4 sm:$0xff]  }
  0x7e   :  { %1839 = vmatpush1.bf16.msra.mxu1 %v3843_v39  ;;  %1717 = vmatprep.subr.bf16.mxu0 %v3844_v40  ;;  %v3933_v39 = vld [vmem:[#allocation2 + $0x48c] ss:$24 sps:$4 sm:$0xff]   ;;  %v3928_v40 = vld [vmem:[#allocation2 + $0x480] ss:$24 sps:$4 sm:$0xff]  }
  0x7f   :  { %1840 = vmatprep.subr.bf16.mxu1 %v3846_v41  ;;  %v3931_v41 = vld [vmem:[#allocation2 + $0x488] ss:$24 sps:$4 sm:$0xff]  }
  0x81   :  { %1718 = vmatpush1.bf16.msra.mxu0 %v3848_v42  ;;  %v3936_v42 = vld [vmem:[#allocation2 + $0x4b4] ss:$24 sps:$4 sm:$0xff]  }
  0x82   :  { %1841 = vmatpush1.bf16.msra.mxu1 %v3849_v43  ;;  %1719 = vmatprep.subr.bf16.mxu0 %v3850_v44  ;;  %v3939_v43 = vld [vmem:[#allocation2 + $0x4bc] ss:$24 sps:$4 sm:$0xff]   ;;  %v3934_v44 = vld [vmem:[#allocation2 + $0x4b0] ss:$24 sps:$4 sm:$0xff]  }
  0x83   :  { %1842 = vmatprep.subr.bf16.mxu1 %v3852_v45  ;;  %v3937_v45 = vld [vmem:[#allocation2 + $0x4b8] ss:$24 sps:$4 sm:$0xff]  }
  0x85   :  { %1720 = vmatpush1.bf16.msra.mxu0 %v3854_v47  ;;  %v3945_v47 = vld [vmem:[#allocation2 + $0x4ec] ss:$24 sps:$4 sm:$0xff]  }
  0x86   :  { %1843 = vmatpush1.bf16.msra.mxu1 %v3855_v49  ;;  %1721 = vmatprep.subr.bf16.mxu0 %v3856_v50  ;;  %v3940_v49 = vld [vmem:[#allocation2 + $0x4e0] ss:$24 sps:$4 sm:$0xff]  }
  0x87   :  { %1844 = vmatprep.subr.bf16.mxu1 %v3858_v51  ;;  %v3943_v50 = vld [vmem:[#allocation2 + $0x4e8] ss:$24 sps:$4 sm:$0xff]   ;;  %v3948_v51 = vld [vmem:[#allocation2 + $0x514] ss:$24 sps:$4 sm:$0xff]  }
  0x89   :  { %1722 = vmatpush1.bf16.msra.mxu0 %v3860_v52  ;;  %v3951_v52 = vld [vmem:[#allocation2 + $0x51c] ss:$24 sps:$4 sm:$0xff]  }
  0x8a   :  { %1845 = vmatpush1.bf16.msra.mxu1 %v3861_v53  ;;  %1723 = vmatprep.subr.bf16.mxu0 %v3862_v54  ;;  %v3946_v53 = vld [vmem:[#allocation2 + $0x510] ss:$24 sps:$4 sm:$0xff]  }
  0x8b   :  { %1846 = vmatprep.subr.bf16.mxu1 %v3864_v55  ;;  %v3949_v54 = vld [vmem:[#allocation2 + $0x518] ss:$24 sps:$4 sm:$0xff]   ;;  %v3954_v55 = vld [vmem:[#allocation2 + $0x544] ss:$24 sps:$4 sm:$0xff]  }
  0x8d   :  { %1724 = vmatpush1.bf16.msra.mxu0 %v3866_v56  ;;  %v3957_v56 = vld [vmem:[#allocation2 + $0x54c] ss:$24 sps:$4 sm:$0xff]  }
  0x8e   :  { %1847 = vmatpush1.bf16.msra.mxu1 %v3867_v57  ;;  %1725 = vmatprep.subr.bf16.mxu0 %v3868_v58  ;;  %v3952_v57 = vld [vmem:[#allocation2 + $0x540] ss:$24 sps:$4 sm:$0xff]  }
  0x8f   :  { %1848 = vmatprep.subr.bf16.mxu1 %v3870_v59  ;;  %v3955_v58 = vld [vmem:[#allocation2 + $0x548] ss:$24 sps:$4 sm:$0xff]   ;;  %v3960_v59 = vld [vmem:[#allocation2 + $0x574] ss:$24 sps:$4 sm:$0xff]  }
  0x91   :  { %1726 = vmatpush1.bf16.msra.mxu0 %v3872_v60  ;;  %v3963_v60 = vld [vmem:[#allocation2 + $0x57c] ss:$24 sps:$4 sm:$0xff]  }
  0x92   :  { %1849 = vmatpush1.bf16.msra.mxu1 %v3873_v61  ;;  %1727 = vmatprep.subr.bf16.mxu0 %v3874_v62  ;;  %v3958_v61 = vld [vmem:[#allocation2 + $0x570] ss:$24 sps:$4 sm:$0xff]  }
  0x93   :  { %1850 = vmatprep.subr.bf16.mxu1 %v3876_v63  ;;  %v3961_v62 = vld [vmem:[#allocation2 + $0x578] ss:$24 sps:$4 sm:$0xff]   ;;  %v3966_v63 = vld [vmem:[#allocation2 + $0x5a4] ss:$24 sps:$4 sm:$0xff]  }
  0x95   :  { %1728 = vmatpush1.bf16.msra.mxu0 %v3878_v0  ;;  %v3969_v0 = vld [vmem:[#allocation2 + $0x5ac] ss:$24 sps:$4 sm:$0xff]  }
  0x96   :  { %1851 = vmatpush1.bf16.msra.mxu1 %v3879_v1  ;;  %1738 = vmatprep.subr.bf16.mxu0 %v3882_v3  ;;  %v3964_v1 = vld [vmem:[#allocation2 + $0x5a0] ss:$24 sps:$4 sm:$0xff]   ;;  %v3972_v3 = vld [vmem:[#allocation2 + $0x5d4] ss:$24 sps:$4 sm:$0xff]  }
  0x97   :  { %1861 = vmatprep.subr.bf16.mxu1 %v3885_v4  ;;  %v3975_v4 = vld [vmem:[#allocation2 + $0x5dc] ss:$24 sps:$4 sm:$0xff]  }
  0x98   :  { %1730 = vmatmul.mubr.bf16.vlgmr.msra.gmra.mrb[0].mxu0 %v4571_v5 }
  0x99   :  { %1853 = vmatmul.mubr.bf16.vlgmr.msra.gmra.mrb[0].mxu1 %v4571_v5  ;;  %1739 = vmatpush1.bf16.msra.mxu0 %v3880_v6  ;;  %v3970_v6 = vld [vmem:[#allocation2 + $0x5d0] ss:$24 sps:$4 sm:$0xff]  }
  0x9a   :  { %1862 = vmatpush1.bf16.msra.mxu1 %v3883_v7  ;;  %1740 = vmatprep.subr.bf16.mxu0 %v3888_v8  ;;  %v3973_v7 = vld [vmem:[#allocation2 + $0x5d8] ss:$24 sps:$4 sm:$0xff]   ;;  %v3978_v8 = vld [vmem:[#allocation2 + $0x604] ss:$24 sps:$4 sm:$0xff]  }
  0x9b   :  { %1863 = vmatprep.subr.bf16.mxu1 %v3891_v9  ;;  %1770 = vmatprep.mubr.bf16.mxu0 %v4578_v32  ;;  %v90_v9 = vld [vmem:[%s4674_s0 + $0x10] sm:$0xff] }
  0x9c   :  { %1893 = vmatprep.mubr.bf16.mxu1 %v4578_v32 }
  0x9d   :  { %1741 = vmatpush1.bf16.msra.mxu0 %v3886_v10  ;;  %v3981_v10 = vld [vmem:[#allocation2 + $0x60c] ss:$24 sps:$4 sm:$0xff]  }
  0x9e   :  { %1864 = vmatpush1.bf16.msra.mxu1 %v3889_v11  ;;  %1742 = vmatprep.subr.bf16.mxu0 %v3894_v12  ;;  %v3976_v11 = vld [vmem:[#allocation2 + $0x600] ss:$24 sps:$4 sm:$0xff]   ;;  %v4585_v12 = vpack.c.bf16 %v90_v9, %v90_v9  ;;  %v4059_v9 = vld [vmem:[#allocation2 + $0x104] ss:$24 sps:$4 sm:$0xff]  }
  0x9f   :  { %1865 = vmatprep.subr.bf16.mxu1 %v3897_v13  ;;  %v93_v13 = vld [vmem:[%s4674_s0 + $0x28] sm:$0xff] }
  0xa1   :  { %1743 = vmatpush1.bf16.msra.mxu0 %v3892_v14  ;;  %v3979_v14 = vld [vmem:[#allocation2 + $0x608] ss:$24 sps:$4 sm:$0xff]  }
  0xa2   :  { %1866 = vmatpush1.bf16.msra.mxu1 %v3895_v15  ;;  %1744 = vmatprep.subr.bf16.mxu0 %v3900_v16  ;;  %v3984_v15 = vld [vmem:[#allocation2 + $0x634] ss:$24 sps:$4 sm:$0xff]  }
  0xa3   :  { %1867 = vmatprep.subr.bf16.mxu1 %v3903_v17  ;;  %v3987_v16 = vld [vmem:[#allocation2 + $0x63c] ss:$24 sps:$4 sm:$0xff]   ;;  %v4590_v17 = vpack.c.bf16 %v93_v13, %v93_v13  ;;  %v4060_v13 = vld [vmem:[#allocation2 + $0x130] ss:$24 sps:$4 sm:$0xff]  }
  0xa5   :  { %1745 = vmatpush1.bf16.msra.mxu0 %v3898_v18  ;;  %v3982_v18 = vld [vmem:[#allocation2 + $0x630] ss:$24 sps:$4 sm:$0xff]  }
  0xa6   :  { %1868 = vmatpush1.bf16.msra.mxu1 %v3901_v19  ;;  %1746 = vmatprep.subr.bf16.mxu0 %v3906_v20  ;;  %v3985_v19 = vld [vmem:[#allocation2 + $0x638] ss:$24 sps:$4 sm:$0xff]   ;;  %v3990_v20 = vld [vmem:[#allocation2 + $0x664] ss:$24 sps:$4 sm:$0xff]  }
  0xa7   :  { %1869 = vmatprep.subr.bf16.mxu1 %v3909_v21  ;;  %v3993_v21 = vld [vmem:[#allocation2 + $0x66c] ss:$24 sps:$4 sm:$0xff]  }
  0xa9   :  { %1747 = vmatpush1.bf16.msra.mxu0 %v3904_v22  ;;  %v3988_v22 = vld [vmem:[#allocation2 + $0x660] ss:$24 sps:$4 sm:$0xff]  }
  0xaa   :  { %1870 = vmatpush1.bf16.msra.mxu1 %v3907_v23  ;;  %1748 = vmatprep.subr.bf16.mxu0 %v3912_v24  ;;  %v3991_v23 = vld [vmem:[#allocation2 + $0x668] ss:$24 sps:$4 sm:$0xff]   ;;  %v3996_v24 = vld [vmem:[#allocation2 + $0x694] ss:$24 sps:$4 sm:$0xff]  }
  0xab   :  { %1871 = vmatprep.subr.bf16.mxu1 %v3915_v25  ;;  %v3999_v25 = vld [vmem:[#allocation2 + $0x69c] ss:$24 sps:$4 sm:$0xff]  }
  0xad   :  { %1749 = vmatpush1.bf16.msra.mxu0 %v3910_v26  ;;  %v3994_v26 = vld [vmem:[#allocation2 + $0x690] ss:$24 sps:$4 sm:$0xff]  }
  0xae   :  { %1872 = vmatpush1.bf16.msra.mxu1 %v3913_v27  ;;  %1750 = vmatprep.subr.bf16.mxu0 %v3918_v28  ;;  %v3997_v27 = vld [vmem:[#allocation2 + $0x698] ss:$24 sps:$4 sm:$0xff]   ;;  %v4002_v28 = vld [vmem:[#allocation2 + $0x6c4] ss:$24 sps:$4 sm:$0xff]  }
  0xaf   :  { %1873 = vmatprep.subr.bf16.mxu1 %v3921_v29  ;;  %v4005_v29 = vld [vmem:[#allocation2 + $0x6cc] ss:$24 sps:$4 sm:$0xff]  }
  0xb1   :  { %1751 = vmatpush1.bf16.msra.mxu0 %v3916_v31  ;;  %v4003_v31 = vld [vmem:[#allocation2 + $0x6c8] ss:$24 sps:$4 sm:$0xff]  }
  0xb2   :  { %1874 = vmatpush1.bf16.msra.mxu1 %v3919_v33  ;;  %1752 = vmatprep.subr.bf16.mxu0 %v3924_v34  ;;  %v4008_v33 = vld [vmem:[#allocation2 + $0x6f4] ss:$24 sps:$4 sm:$0xff]  }
  0xb3   :  { %1875 = vmatprep.subr.bf16.mxu1 %v3927_v35  ;;  %v4011_v34 = vld [vmem:[#allocation2 + $0x6fc] ss:$24 sps:$4 sm:$0xff]   ;;  %v4006_v35 = vld [vmem:[#allocation2 + $0x6f0] ss:$24 sps:$4 sm:$0xff]  }
  0xb5   :  { %1753 = vmatpush1.bf16.msra.mxu0 %v3922_v36  ;;  %v4009_v36 = vld [vmem:[#allocation2 + $0x6f8] ss:$24 sps:$4 sm:$0xff]  }
  0xb6   :  { %1876 = vmatpush1.bf16.msra.mxu1 %v3925_v37  ;;  %1754 = vmatprep.subr.bf16.mxu0 %v3930_v38  ;;  %v4014_v37 = vld [vmem:[#allocation2 + $0x724] ss:$24 sps:$4 sm:$0xff]  }
  0xb7   :  { %1877 = vmatprep.subr.bf16.mxu1 %v3933_v39  ;;  %v4017_v38 = vld [vmem:[#allocation2 + $0x72c] ss:$24 sps:$4 sm:$0xff]   ;;  %v4012_v39 = vld [vmem:[#allocation2 + $0x720] ss:$24 sps:$4 sm:$0xff]  }
  0xb9   :  { %1755 = vmatpush1.bf16.msra.mxu0 %v3928_v40  ;;  %v4015_v40 = vld [vmem:[#allocation2 + $0x728] ss:$24 sps:$4 sm:$0xff]  }
  0xba   :  { %1878 = vmatpush1.bf16.msra.mxu1 %v3931_v41  ;;  %1756 = vmatprep.subr.bf16.mxu0 %v3936_v42  ;;  %v4020_v41 = vld [vmem:[#allocation2 + $0x754] ss:$24 sps:$4 sm:$0xff]  }
  0xbb   :  { %1879 = vmatprep.subr.bf16.mxu1 %v3939_v43  ;;  %v4023_v42 = vld [vmem:[#allocation2 + $0x75c] ss:$24 sps:$4 sm:$0xff]   ;;  %v4018_v43 = vld [vmem:[#allocation2 + $0x750] ss:$24 sps:$4 sm:$0xff]  }
  0xbd   :  { %1757 = vmatpush1.bf16.msra.mxu0 %v3934_v44  ;;  %v4021_v44 = vld [vmem:[#allocation2 + $0x758] ss:$24 sps:$4 sm:$0xff]  }
  0xbe   :  { %1880 = vmatpush1.bf16.msra.mxu1 %v3937_v45  ;;  %1758 = vmatprep.subr.bf16.mxu0 %v3942_v46  ;;  %v4026_v45 = vld [vmem:[#allocation2 + $0x784] ss:$24 sps:$4 sm:$0xff]  }
  0xbf   :  { %1881 = vmatprep.subr.bf16.mxu1 %v3945_v47  ;;  %v4029_v46 = vld [vmem:[#allocation2 + $0x78c] ss:$24 sps:$4 sm:$0xff]   ;;  %v4024_v47 = vld [vmem:[#allocation2 + $0x780] ss:$24 sps:$4 sm:$0xff]  }
  0xc1   :  { %1759 = vmatpush1.bf16.msra.mxu0 %v3940_v49  ;;  %v4027_v49 = vld [vmem:[#allocation2 + $0x788] ss:$24 sps:$4 sm:$0xff]  }
  0xc2   :  { %1882 = vmatpush1.bf16.msra.mxu1 %v3943_v50  ;;  %1760 = vmatprep.subr.bf16.mxu0 %v3948_v51  ;;  %v4032_v50 = vld [vmem:[#allocation2 + $0x7b4] ss:$24 sps:$4 sm:$0xff]  }
  0xc3   :  { %1883 = vmatprep.subr.bf16.mxu1 %v3951_v52  ;;  %v4035_v51 = vld [vmem:[#allocation2 + $0x7bc] ss:$24 sps:$4 sm:$0xff]   ;;  %v4030_v52 = vld [vmem:[#allocation2 + $0x7b0] ss:$24 sps:$4 sm:$0xff]  }
  0xc5   :  { %1761 = vmatpush1.bf16.msra.mxu0 %v3946_v53  ;;  %v4036_v53 = vld [vmem:[#allocation2 + $0x7e4] ss:$24 sps:$4 sm:$0x1f]  }
  0xc6   :  { %1884 = vmatpush1.bf16.msra.mxu1 %v3949_v54  ;;  %1762 = vmatprep.subr.bf16.mxu0 %v3954_v55  ;;  %v4038_v54 = vld [vmem:[#allocation2 + $0x7ec] ss:$24 sps:$4 sm:$0x1f]   ;;  %v4040_v55 = vld [vmem:[#allocation2 + $0x7e0] ss:$24 sps:$4 sm:$0x1f]  }
  0xc7   :  { %1885 = vmatprep.subr.bf16.mxu1 %v3957_v56  ;;  %v4033_v56 = vld [vmem:[#allocation2 + $0x7b8] ss:$24 sps:$4 sm:$0xff]  }
  0xc9   :  { %1763 = vmatpush1.bf16.msra.mxu0 %v3952_v57  ;;  %v4041_v57 = vld [vmem:[#allocation2 + $0x7e8] ss:$24 sps:$4 sm:$0x1f]  }
  0xca   :  { %1886 = vmatpush1.bf16.msra.mxu1 %v3955_v58  ;;  %1764 = vmatprep.subr.bf16.mxu0 %v3960_v59  ;;  %v92_v58 = vld [vmem:[%s4674_s0 + $0x20] sm:$0xff]  ;;  %v4044_v59 = vld [vmem:[#allocation2 + $0x14] ss:$24 sps:$4 sm:$0xff]   ;;  %s2066_s0 = sld [smem:[#allocation10]] }
  0xcb   :  { %1887 = vmatprep.subr.bf16.mxu1 %v3963_v60  ;;  %v1680_v60 = vsel %vm1678_vm1, %v4040_v55, 0  ;;  %v4095_v55 = vld [vmem:[#allocation2 + $0x344] ss:$24 sps:$4 sm:$0xff]  }
  0xcd   :  { %1765 = vmatpush1.bf16.msra.mxu0 %v3958_v61  ;;  %v1686_v61 = vsel %vm1678_vm1, %v4041_v57, 0  ;;  %v4203_v57 = vld [vmem:[#allocation5 + $0xa4] ss:$8 sps:$4 sm:$0xff]  }
  0xce   :  { %1888 = vmatpush1.bf16.msra.mxu1 %v3961_v62  ;;  %1766 = vmatprep.subr.bf16.mxu0 %v3966_v63  ;;  %v4605_v62 = vpack.c.bf16 %v92_v58, %v92_v58  ;;  %v4042_v63 = vld [vmem:[#allocation2 + $0x10] ss:$24 sps:$4 sm:$0xff]   ;;  %v4093_v58 = vld [vmem:[#allocation2 + $0x340] ss:$24 sps:$4 sm:$0xff]  }
  0xcf   :  { %1889 = vmatprep.subr.bf16.mxu1 %v3969_v0  ;;  %v4047_v0 = vld [vmem:[#allocation2 + $0x44] ss:$24 sps:$4 sm:$0xff]  }
  0xd1   :  { %1767 = vmatpush1.bf16.msra.mxu0 %v3964_v1  ;;  %v4045_v1 = vld [vmem:[#allocation2 + $0x40] ss:$24 sps:$4 sm:$0xff]  }
  0xd2   :  { %1890 = vmatpush1.bf16.msra.mxu1 %v3967_v2  ;;  %1768 = vmatprep.subr.bf16.mxu0 %v3972_v3  ;;  %v4050_v2 = vld [vmem:[#allocation2 + $0x74] ss:$24 sps:$4 sm:$0xff]   ;;  %v4048_v3 = vld [vmem:[#allocation2 + $0x70] ss:$24 sps:$4 sm:$0xff]  }
  0xd3   :  { %1891 = vmatprep.subr.bf16.mxu1 %v3975_v4  ;;  %v4053_v4 = vld [vmem:[#allocation2 + $0xa4] ss:$24 sps:$4 sm:$0xff]  }
  0xd5   :  { %1769 = vmatpush1.bf16.msra.mxu0 %v3970_v6  ;;  %v4051_v6 = vld [vmem:[#allocation2 + $0xa0] ss:$24 sps:$4 sm:$0xff]  }
  0xd6   :  { %1892 = vmatpush1.bf16.msra.mxu1 %v3973_v7  ;;  %1779 = vmatprep.subr.bf16.mxu0 %v3978_v8  ;;  %v4056_v7 = vld [vmem:[#allocation2 + $0xd4] ss:$24 sps:$4 sm:$0xff]   ;;  %v4054_v8 = vld [vmem:[#allocation2 + $0xd0] ss:$24 sps:$4 sm:$0xff]  }
  0xd7   :  { %1902 = vmatprep.subr.bf16.mxu1 %v3981_v10  ;;  %v4057_v10 = vld [vmem:[#allocation2 + $0x100] ss:$24 sps:$4 sm:$0xff]  }
  0xd8   :  { %1771 = vmatmul.mubr.bf16.vlgmr.msra.gmra.mrb[0].mxu0 %v4585_v12 }
  0xd9   :  { %1894 = vmatmul.mubr.bf16.vlgmr.msra.gmra.mrb[0].mxu1 %v4585_v12  ;;  %1780 = vmatpush1.bf16.msra.mxu0 %v3976_v11  ;;  %v4062_v11 = vld [vmem:[#allocation2 + $0x134] ss:$24 sps:$4 sm:$0xff]  }
  0xda   :  { %1903 = vmatpush1.bf16.msra.mxu1 %v3979_v14  ;;  %1781 = vmatprep.subr.bf16.mxu0 %v3984_v15  ;;  %v4063_v14 = vld [vmem:[#allocation2 + $0x160] ss:$24 sps:$4 sm:$0xff]   ;;  %v4068_v15 = vld [vmem:[#allocation2 + $0x194] ss:$24 sps:$4 sm:$0xff]  }
  0xdb   :  { %1904 = vmatprep.subr.bf16.mxu1 %v3987_v16  ;;  %3509 = vmatprep.mubr.msk.bf16.mxu0 %vm1674_vm0, %v4590_v17  ;;  %v4162_v16 = vld [vmem:[#allocation5] ss:$8 sps:$4 sm:$0xff]  }
  0xdc   :  { %3511 = vmatprep.mubr.msk.bf16.mxu1 %vm1674_vm0, %v4590_v17 }
  0xdd   :  { %1782 = vmatpush1.bf16.msra.mxu0 %v3982_v18  ;;  %v4164_v18 = vld [vmem:[#allocation5 + $0x4] ss:$8 sps:$4 sm:$0xff]  }
  0xde   :  { %1905 = vmatpush1.bf16.msra.mxu1 %v3985_v19  ;;  %1783 = vmatprep.subr.bf16.mxu0 %v3990_v20  ;;  %v4066_v19 = vld [vmem:[#allocation2 + $0x190] ss:$24 sps:$4 sm:$0xff]   ;;  %v4071_v20 = vld [vmem:[#allocation2 + $0x1c4] ss:$24 sps:$4 sm:$0xff]  }
  0xdf   :  { %1906 = vmatprep.subr.bf16.mxu1 %v3993_v21  ;;  %v4168_v21 = vld [vmem:[#allocation5 + $0x10] ss:$8 sps:$4 sm:$0xff]  }
  0xe1   :  { %1784 = vmatpush1.bf16.msra.mxu0 %v3988_v22  ;;  %v4170_v22 = vld [vmem:[#allocation5 + $0x14] ss:$8 sps:$4 sm:$0xff]  }
  0xe2   :  { %1907 = vmatpush1.bf16.msra.mxu1 %v3991_v23  ;;  %1785 = vmatprep.subr.bf16.mxu0 %v3996_v24  ;;  %v4069_v23 = vld [vmem:[#allocation2 + $0x1c0] ss:$24 sps:$4 sm:$0xff]   ;;  %v4074_v24 = vld [vmem:[#allocation2 + $0x1f4] ss:$24 sps:$4 sm:$0xff]  }
  0xe3   :  { %1908 = vmatprep.subr.bf16.mxu1 %v3999_v25  ;;  %v4174_v25 = vld [vmem:[#allocation5 + $0x20] ss:$8 sps:$4 sm:$0xff]  }
  0xe5   :  { %1786 = vmatpush1.bf16.msra.mxu0 %v3994_v26  ;;  %v4176_v26 = vld [vmem:[#allocation5 + $0x24] ss:$8 sps:$4 sm:$0xff]  }
  0xe6   :  { %1909 = vmatpush1.bf16.msra.mxu1 %v3997_v27  ;;  %1787 = vmatprep.subr.bf16.mxu0 %v4002_v28  ;;  %v4072_v27 = vld [vmem:[#allocation2 + $0x1f0] ss:$24 sps:$4 sm:$0xff]   ;;  %v4077_v28 = vld [vmem:[#allocation2 + $0x224] ss:$24 sps:$4 sm:$0xff]  }
  0xe7   :  { %1910 = vmatprep.subr.bf16.mxu1 %v4005_v29  ;;  %v4179_v29 = vld [vmem:[#allocation5 + $0x30] ss:$8 sps:$4 sm:$0xff]  }
  0xe9   :  { %1788 = vmatpush1.bf16.msra.mxu0 %v4000_v30  ;;  %v4181_v30 = vld [vmem:[#allocation5 + $0x34] ss:$8 sps:$4 sm:$0xff]  }
  0xea   :  { %1911 = vmatpush1.bf16.msra.mxu1 %v4003_v31  ;;  %1789 = vmatprep.subr.bf16.mxu0 %v4008_v33  ;;  %v4075_v31 = vld [vmem:[#allocation2 + $0x220] ss:$24 sps:$4 sm:$0xff]   ;;  %v4080_v33 = vld [vmem:[#allocation2 + $0x254] ss:$24 sps:$4 sm:$0xff]  }
  0xeb   :  { %1912 = vmatprep.subr.bf16.mxu1 %v4011_v34  ;;  %v4185_v34 = vld [vmem:[#allocation5 + $0x44] ss:$8 sps:$4 sm:$0xff]  }
  0xed   :  { %1790 = vmatpush1.bf16.msra.mxu0 %v4006_v35  ;;  %v4183_v35 = vld [vmem:[#allocation5 + $0x40] ss:$8 sps:$4 sm:$0xff]  }
  0xee   :  { %1913 = vmatpush1.bf16.msra.mxu1 %v4009_v36  ;;  %1791 = vmatprep.subr.bf16.mxu0 %v4014_v37  ;;  %v4188_v36 = vld [vmem:[#allocation5 + $0x54] ss:$8 sps:$4 sm:$0xff]   ;;  %v4078_v37 = vld [vmem:[#allocation2 + $0x250] ss:$24 sps:$4 sm:$0xff]  }
  0xef   :  { %1914 = vmatprep.subr.bf16.mxu1 %v4017_v38  ;;  %v4186_v38 = vld [vmem:[#allocation5 + $0x50] ss:$8 sps:$4 sm:$0xff]  }
  0xf1   :  { %1792 = vmatpush1.bf16.msra.mxu0 %v4012_v39  ;;  %v4083_v39 = vld [vmem:[#allocation2 + $0x284] ss:$24 sps:$4 sm:$0xff]  }
  0xf2   :  { %1915 = vmatpush1.bf16.msra.mxu1 %v4015_v40  ;;  %1793 = vmatprep.subr.bf16.mxu0 %v4020_v41  ;;  %v4191_v40 = vld [vmem:[#allocation5 + $0x64] ss:$8 sps:$4 sm:$0xff]   ;;  %v4081_v41 = vld [vmem:[#allocation2 + $0x280] ss:$24 sps:$4 sm:$0xff]  }
  0xf3   :  { %1916 = vmatprep.subr.bf16.mxu1 %v4023_v42  ;;  %v4189_v42 = vld [vmem:[#allocation5 + $0x60] ss:$8 sps:$4 sm:$0xff]  }
  0xf5   :  { %1794 = vmatpush1.bf16.msra.mxu0 %v4018_v43  ;;  %v4086_v43 = vld [vmem:[#allocation2 + $0x2b4] ss:$24 sps:$4 sm:$0xff]  }
  0xf6   :  { %1917 = vmatpush1.bf16.msra.mxu1 %v4021_v44  ;;  %1795 = vmatprep.subr.bf16.mxu0 %v4026_v45  ;;  %v4194_v44 = vld [vmem:[#allocation5 + $0x74] ss:$8 sps:$4 sm:$0xff]   ;;  %v4084_v45 = vld [vmem:[#allocation2 + $0x2b0] ss:$24 sps:$4 sm:$0xff]  }
  0xf7   :  { %1918 = vmatprep.subr.bf16.mxu1 %v4029_v46  ;;  %v4192_v46 = vld [vmem:[#allocation5 + $0x70] ss:$8 sps:$4 sm:$0xff]  }
  0xf9   :  { %1796 = vmatpush1.bf16.msra.mxu0 %v4024_v47  ;;  %v4089_v47 = vld [vmem:[#allocation2 + $0x2e4] ss:$24 sps:$4 sm:$0xff]  }
  0xfa   :  { %1919 = vmatpush1.bf16.msra.mxu1 %v4027_v49  ;;  %1797 = vmatprep.subr.bf16.mxu0 %v4032_v50  ;;  %v4197_v49 = vld [vmem:[#allocation5 + $0x84] ss:$8 sps:$4 sm:$0xff]   ;;  %v4087_v50 = vld [vmem:[#allocation2 + $0x2e0] ss:$24 sps:$4 sm:$0xff]  }
  0xfb   :  { %1920 = vmatprep.subr.bf16.mxu1 %v4035_v51  ;;  %v4195_v51 = vld [vmem:[#allocation5 + $0x80] ss:$8 sps:$4 sm:$0xff]  }
  0xfd   :  { %1798 = vmatpush1.bf16.msra.mxu0 %v4030_v52  ;;  %v4092_v52 = vld [vmem:[#allocation2 + $0x314] ss:$24 sps:$4 sm:$0xff]  }
  0xfe   :  { %1921 = vmatpush1.bf16.msra.mxu1 %v4033_v56  ;;  %3508 = vmatprep.subr.msk.bf16.mxu0 %vm1678_vm1, %v4036_v53  ;;  %v4200_v53 = vld [vmem:[#allocation5 + $0x94] ss:$8 sps:$4 sm:$0xff]   ;;  %v4198_v56 = vld [vmem:[#allocation5 + $0x90] ss:$8 sps:$4 sm:$0xff]  }
  0xff   :  { %3510 = vmatprep.subr.msk.bf16.mxu1 %vm1678_vm1, %v4038_v54  ;;  %v4090_v54 = vld [vmem:[#allocation2 + $0x310] ss:$24 sps:$4 sm:$0xff]  }
 0x101   :  { %1800 = vmatpush1.bf16.msra.mxu0 %v1680_v60  ;;  %v4201_v60 = vld [vmem:[#allocation5 + $0xa0] ss:$8 sps:$4 sm:$0xff]  }
 0x102   :  { %1923 = vmatpush1.bf16.msra.mxu1 %v1686_v61  ;;  %1943 = vmatprep.subr.bf16.mxu0 %v4044_v59  ;;  %v4098_v59 = vld [vmem:[#allocation2 + $0x374] ss:$24 sps:$4 sm:$0xff]  }
 0x103   :  { %2680 = vmatprep.subr.bf16.mxu1 %v4164_v18  ;;  %v4206_v61 = vld [vmem:[#allocation5 + $0xb4] ss:$8 sps:$4 sm:$0xff]   ;;  %v4111_v18 = vld [vmem:[#allocation2 + $0x460] ss:$24 sps:$4 sm:$0xff]  }
 0x104   :  { %1812 = vmatmul.mubr.bf16.vlgmr.msra.gmra.mrb[0].mxu0 %v4605_v62 }
 0x105   :  { %1935 = vmatmul.mubr.bf16.vlgmr.msra.gmra.mrb[0].mxu1 %v4605_v62  ;;  %1944 = vmatpush1.bf16.msra.mxu0 %v4042_v63  ;;  %v4096_v63 = vld [vmem:[#allocation2 + $0x370] ss:$24 sps:$4 sm:$0xff]  }
 0x106   :  { %1975 = vmatprep.mubr.bf16.mxu0 %v4564_v48  ;;  %1945 = vmatprep.subr.bf16.mxu0 %v4047_v0  ;;  %v4065_v48 = vld [vmem:[#allocation2 + $0x164] ss:$24 sps:$4 sm:$0xff]  }
 0x107   :  { %2681 = vmatpush1.bf16.msra.mxu1 %v4162_v16  ;;  %v4101_v0 = vld [vmem:[#allocation2 + $0x3a4] ss:$24 sps:$4 sm:$0xff]   ;;  %v4216_v16 = vld [vmem:[#allocation5 + $0xf0] ss:$8 sps:$4 sm:$0xff]  }
 0x108   :  { %2682 = vmatprep.subr.bf16.mxu1 %v4170_v22  ;;  %v4119_v22 = vld [vmem:[#allocation2 + $0x4c4] ss:$24 sps:$4 sm:$0xff]  }
 0x109   :  { %1946 = vmatpush1.bf16.msra.mxu0 %v4045_v1  ;;  %v4204_v1 = vld [vmem:[#allocation5 + $0xb0] ss:$8 sps:$4 sm:$0xff]  }
 0x10a   :  { %1947 = vmatprep.subr.bf16.mxu0 %v4050_v2  ;;  %v4209_v2 = vld [vmem:[#allocation5 + $0xc4] ss:$8 sps:$4 sm:$0xff]  }
 0x10b   :  { %2683 = vmatpush1.bf16.msra.mxu1 %v4168_v21  ;;  %v4114_v21 = vld [vmem:[#allocation2 + $0x490] ss:$24 sps:$4 sm:$0xff]  }
 0x10c   :  { %2684 = vmatprep.subr.bf16.mxu1 %v4176_v26  ;;  %v4125_v26 = vld [vmem:[#allocation2 + $0x524] ss:$24 sps:$4 sm:$0xff]  }
 0x10d   :  { %1948 = vmatpush1.bf16.msra.mxu0 %v4048_v3  ;;  %v4104_v3 = vld [vmem:[#allocation2 + $0x3d4] ss:$24 sps:$4 sm:$0xff]  }
 0x10e   :  { %1949 = vmatprep.subr.bf16.mxu0 %v4053_v4  ;;  %v4212_v4 = vld [vmem:[#allocation5 + $0xd4] ss:$8 sps:$4 sm:$0xff]  }
 0x10f   :  { %2685 = vmatpush1.bf16.msra.mxu1 %v4174_v25  ;;  %v4120_v25 = vld [vmem:[#allocation2 + $0x4f0] ss:$24 sps:$4 sm:$0xff]  }
 0x110   :  { %2686 = vmatprep.subr.bf16.mxu1 %v4181_v30  ;;  %v4131_v30 = vld [vmem:[#allocation2 + $0x584] ss:$24 sps:$4 sm:$0xff]  }
 0x111   :  { %1950 = vmatpush1.bf16.msra.mxu0 %v4051_v6  ;;  %v4102_v6 = vld [vmem:[#allocation2 + $0x3d0] ss:$24 sps:$4 sm:$0xff]  }
 0x112   :  { %1951 = vmatprep.subr.bf16.mxu0 %v4056_v7  ;;  %v4107_v7 = vld [vmem:[#allocation2 + $0x404] ss:$24 sps:$4 sm:$0xff]  }
 0x113   :  { %2687 = vmatpush1.bf16.msra.mxu1 %v4179_v29  ;;  %v4126_v29 = vld [vmem:[#allocation2 + $0x550] ss:$24 sps:$4 sm:$0xff]  }
 0x114   :  { %2688 = vmatprep.subr.bf16.mxu1 %v4185_v34  ;;  %v4132_v34 = vld [vmem:[#allocation2 + $0x5b0] ss:$24 sps:$4 sm:$0xff]  }
 0x115   :  { %1952 = vmatpush1.bf16.msra.mxu0 %v4054_v8  ;;  %v4210_v8 = vld [vmem:[#allocation5 + $0xd0] ss:$8 sps:$4 sm:$0xff]  }
 0x116   :  { %1953 = vmatprep.subr.bf16.mxu0 %v4059_v9  ;;  %v4105_v9 = vld [vmem:[#allocation2 + $0x400] ss:$24 sps:$4 sm:$0xff]  }
 0x117   :  { %2689 = vmatpush1.bf16.msra.mxu1 %v4183_v35  ;;  %v4137_v35 = vld [vmem:[#allocation2 + $0x5e4] ss:$24 sps:$4 sm:$0xff]  }
 0x118   :  { %2690 = vmatprep.subr.bf16.mxu1 %v4188_v36  ;;  %v4135_v36 = vld [vmem:[#allocation2 + $0x5e0] ss:$24 sps:$4 sm:$0xff]  }
 0x119   :  { %1954 = vmatpush1.bf16.msra.mxu0 %v4057_v10  ;;  %v4110_v10 = vld [vmem:[#allocation2 + $0x434] ss:$24 sps:$4 sm:$0xff]  }
 0x11a   :  { %1955 = vmatprep.subr.bf16.mxu0 %v4062_v11  ;;  %v4215_v11 = vld [vmem:[#allocation5 + $0xe4] ss:$8 sps:$4 sm:$0xff]  }
 0x11b   :  { %2691 = vmatpush1.bf16.msra.mxu1 %v4186_v38  ;;  %v4138_v38 = vld [vmem:[#allocation2 + $0x610] ss:$24 sps:$4 sm:$0xff]  }
 0x11c   :  { %2692 = vmatprep.subr.bf16.mxu1 %v4191_v40  ;;  %v4141_v40 = vld [vmem:[#allocation2 + $0x640] ss:$24 sps:$4 sm:$0xff]  }
 0x11d   :  { %1956 = vmatpush1.bf16.msra.mxu0 %v4060_v13  ;;  %v4213_v13 = vld [vmem:[#allocation5 + $0xe0] ss:$8 sps:$4 sm:$0xff]  }
 0x11e   :  { %1957 = vmatprep.subr.bf16.mxu0 %v4065_v48  ;;  %v4108_v48 = vld [vmem:[#allocation2 + $0x430] ss:$24 sps:$4 sm:$0xff]  }
 0x11f   :  { %2693 = vmatpush1.bf16.msra.mxu1 %v4189_v42  ;;  %v4144_v42 = vld [vmem:[#allocation2 + $0x670] ss:$24 sps:$4 sm:$0xff]  }
 0x120   :  { %2694 = vmatprep.subr.bf16.mxu1 %v4194_v44  ;;  %v4147_v44 = vld [vmem:[#allocation2 + $0x6a0] ss:$24 sps:$4 sm:$0xff]  }
 0x121   :  { %1958 = vmatpush1.bf16.msra.mxu0 %v4063_v14  ;;  %v4113_v14 = vld [vmem:[#allocation2 + $0x464] ss:$24 sps:$4 sm:$0xff]  }
 0x122   :  { %1959 = vmatprep.subr.bf16.mxu0 %v4068_v15  ;;  %v4218_v15 = vld [vmem:[#allocation5 + $0xf4] ss:$8 sps:$4 sm:$0xff]  }
 0x123   :  { %2695 = vmatpush1.bf16.msra.mxu1 %v4192_v46  ;;  %v4150_v46 = vld [vmem:[#allocation2 + $0x6d0] ss:$24 sps:$4 sm:$0xff]  }
 0x124   :  { %2696 = vmatprep.subr.bf16.mxu1 %v4197_v49  ;;  %v4158_v49 = vld [vmem:[#allocation2 + $0x734] ss:$24 sps:$4 sm:$0xff]  }
 0x125   :  { %1960 = vmatpush1.bf16.msra.mxu0 %v4066_v19  ;;  %v4116_v19 = vld [vmem:[#allocation2 + $0x494] ss:$24 sps:$4 sm:$0xff]  }
 0x126   :  { %1961 = vmatprep.subr.bf16.mxu0 %v4071_v20  ;;  %v4221_v20 = vld [vmem:[#allocation5 + $0x104] ss:$8 sps:$4 sm:$0xff]  }
 0x127   :  { %2697 = vmatpush1.bf16.msra.mxu1 %v4195_v51  ;;  %v4159_v51 = vld [vmem:[#allocation2 + $0x760] ss:$24 sps:$4 sm:$0xff]  }
 0x128   :  { %2698 = vmatprep.subr.bf16.mxu1 %v4200_v53  ;;  %v4165_v53 = vld [vmem:[#allocation2 + $0x790] ss:$24 sps:$4 sm:$0xff]  }
 0x129   :  { %1962 = vmatpush1.bf16.msra.mxu0 %v4069_v23  ;;  %v4117_v23 = vld [vmem:[#allocation2 + $0x4c0] ss:$24 sps:$4 sm:$0xff]  }
 0x12a   :  { %1963 = vmatprep.subr.bf16.mxu0 %v4074_v24  ;;  %v4122_v24 = vld [vmem:[#allocation2 + $0x4f4] ss:$24 sps:$4 sm:$0xff]  }
 0x12b   :  { %2699 = vmatpush1.bf16.msra.mxu1 %v4198_v56  ;;  %v4177_v56 = vld [vmem:[#allocation2 + $0x7f4] ss:$24 sps:$4 sm:$0x1f]  }
 0x12c   :  { %2700 = vmatprep.subr.bf16.mxu1 %v4203_v57  ;;  %v4182_v57 = vld [vmem:[#allocation2 + $0x7f0] ss:$24 sps:$4 sm:$0x1f]  }
 0x12d   :  { %1964 = vmatpush1.bf16.msra.mxu0 %v4072_v27  ;;  %v4123_v27 = vld [vmem:[#allocation2 + $0x520] ss:$24 sps:$4 sm:$0xff]  }
 0x12e   :  { %1965 = vmatprep.subr.bf16.mxu0 %v4077_v28  ;;  %v4128_v28 = vld [vmem:[#allocation2 + $0x554] ss:$24 sps:$4 sm:$0xff]  }
 0x12f   :  { %2701 = vmatpush1.bf16.msra.mxu1 %v4201_v60 }
 0x130   :  { %2702 = vmatprep.subr.bf16.mxu1 %v4206_v61 }
 0x131   :  { %1966 = vmatpush1.bf16.msra.mxu0 %v4075_v31  ;;  %v4129_v31 = vld [vmem:[#allocation2 + $0x580] ss:$24 sps:$4 sm:$0xff]  }
 0x132   :  { %1967 = vmatprep.subr.bf16.mxu0 %v4080_v33  ;;  %v4134_v33 = vld [vmem:[#allocation2 + $0x5b4] ss:$24 sps:$4 sm:$0xff]  }
 0x133   :  { %2703 = vmatpush1.bf16.msra.mxu1 %v4204_v1 }
 0x134   :  { %2704 = vmatprep.subr.bf16.mxu1 %v4209_v2 }
 0x135   :  { %1968 = vmatpush1.bf16.msra.mxu0 %v4078_v37  ;;  %v4140_v37 = vld [vmem:[#allocation2 + $0x614] ss:$24 sps:$4 sm:$0xff]  }
 0x136   :  { %1969 = vmatprep.subr.bf16.mxu0 %v4083_v39  ;;  %v4143_v39 = vld [vmem:[#allocation2 + $0x644] ss:$24 sps:$4 sm:$0xff]  }
 0x139   :  { %1970 = vmatpush1.bf16.msra.mxu0 %v4081_v41  ;;  %v4146_v41 = vld [vmem:[#allocation2 + $0x674] ss:$24 sps:$4 sm:$0xff]  }
 0x13a   :  { %1971 = vmatprep.subr.bf16.mxu0 %v4086_v43  ;;  %v4149_v43 = vld [vmem:[#allocation2 + $0x6a4] ss:$24 sps:$4 sm:$0xff]  }
 0x13d   :  { %1972 = vmatpush1.bf16.msra.mxu0 %v4084_v45  ;;  %v4152_v45 = vld [vmem:[#allocation2 + $0x6d4] ss:$24 sps:$4 sm:$0xff]  }
 0x13e   :  { %1973 = vmatprep.subr.bf16.mxu0 %v4089_v47  ;;  %v4155_v47 = vld [vmem:[#allocation2 + $0x704] ss:$24 sps:$4 sm:$0xff]  }
 0x141   :  { %1974 = vmatpush1.bf16.msra.mxu0 %v4087_v50  ;;  %v4161_v50 = vld [vmem:[#allocation2 + $0x764] ss:$24 sps:$4 sm:$0xff]  }
 0x142   :  { %1984 = vmatprep.subr.bf16.mxu0 %v4092_v52  ;;  %v4167_v52 = vld [vmem:[#allocation2 + $0x794] ss:$24 sps:$4 sm:$0xff]  }
 0x144   :  { %1976 = vmatmul.mubr.bf16.vlgmr.msra.gmra.mrb[4].mxu0 %v4571_v5  ;;  %v4099_v5 = vld [vmem:[#allocation2 + $0x3a0] ss:$24 sps:$4 sm:$0xff]  }
 0x145   :  { %1985 = vmatpush1.bf16.msra.mxu0 %v4090_v54  ;;  %2016 = vmatprep.mubr.bf16.mxu0 %v4578_v32  ;;  %v4207_v32 = vld [vmem:[#allocation5 + $0xc0] ss:$8 sps:$4 sm:$0xff]   ;;  %v4173_v54 = vld [vmem:[#allocation2 + $0x7c4] ss:$24 sps:$4 sm:$0xff]  }
 0x146   :  { %1986 = vmatprep.subr.bf16.mxu0 %v4095_v55  ;;  %2705 = vmatpush1.bf16.msra.mxu1 %v4207_v32  ;;  %v4171_v55 = vld [vmem:[#allocation2 + $0x7c0] ss:$24 sps:$4 sm:$0xff]   ;;  %v4632_v32 = vstv %s2066_s0 }
 0x147   :  { %2706 = vmatprep.subr.bf16.mxu1 %v4212_v4 }
 0x149   :  { %1987 = vmatpush1.bf16.msra.mxu0 %v4093_v58  ;;  %v1692_v58 = vsel %vm1678_vm1, %v4182_v57, 0  ;;  %v4319_v57 = vld [vmem:[#allocation7 + $0xf0] ss:$12 sps:$4 sm:$0xff]  }
 0x14a   :  { %1988 = vmatprep.subr.bf16.mxu0 %v4098_v59  ;;  %2707 = vmatpush1.bf16.msra.mxu1 %v4210_v8  ;;  %v360_v59 = vlaneseq }
 0x14b   :  { %2708 = vmatprep.subr.bf16.mxu1 %v4215_v11 }
 0x14c   :  { %v4618_v60 = vshrl.u32 %v360_v59, 7  ;;  %v4263_v59 = vld [vmem:[#allocation5 + $0x1e4] ss:$8 sps:$4 sm:$0xff]  }
 0x14d   :  { %1989 = vmatpush1.bf16.msra.mxu0 %v4096_v63  ;;  %v4621_v63 = vld [vmem:[#allocation8] sm:$0x3f] }
 0x14e   :  { %1990 = vmatprep.subr.bf16.mxu0 %v4101_v0  ;;  %2709 = vmatpush1.bf16.msra.mxu1 %v4213_v13  ;;  %v362_v61 = vsub.s32 0, %v4618_v60  ;;  %v366_v0 = vsub.s32 1, %v4618_v60  ;;  %v374_v1 = vsub.s32 3, %v4618_v60 }
 0x14f   :  { %2710 = vmatprep.subr.bf16.mxu1 %v4218_v15 }
 0x150   :  { %v363_v2 = vrot.slane %v4621_v63, %v362_v61 }
 0x151   :  { %1991 = vmatpush1.bf16.msra.mxu0 %v4099_v5  ;;  %v375_v5 = vrot.slane %v4621_v63, %v374_v1 }
 0x152   :  { %1992 = vmatprep.subr.bf16.mxu0 %v4104_v3  ;;  %2711 = vmatpush1.bf16.msra.mxu1 %v4216_v16 }
 0x153   :  { %2721 = vmatprep.subr.bf16.mxu1 %v4221_v20 }
 0x155   :  { %1993 = vmatpush1.bf16.msra.mxu0 %v4102_v6 }
 0x156   :  { %1994 = vmatprep.subr.bf16.mxu0 %v4107_v7 }
 0x159   :  { %1995 = vmatpush1.bf16.msra.mxu0 %v4105_v9 }
 0x15a   :  { %1996 = vmatprep.subr.bf16.mxu0 %v4110_v10 }
 0x15d   :  { %1997 = vmatpush1.bf16.msra.mxu0 %v4108_v48 }
 0x15e   :  { %1998 = vmatprep.subr.bf16.mxu0 %v4113_v14 }
 0x161   :  { %1999 = vmatpush1.bf16.msra.mxu0 %v4111_v18 }
 0x162   :  { %2000 = vmatprep.subr.bf16.mxu0 %v4116_v19 }
 0x165   :  { %2001 = vmatpush1.bf16.msra.mxu0 %v4114_v21 }
 0x166   :  { %2002 = vmatprep.subr.bf16.mxu0 %v4119_v22 }
 0x169   :  { %2003 = vmatpush1.bf16.msra.mxu0 %v4117_v23  ;;  %v4219_v23 = vld [vmem:[#allocation5 + $0x100] ss:$8 sps:$4 sm:$0xff]  }
 0x16a   :  { %2004 = vmatprep.subr.bf16.mxu0 %v4122_v24 }
 0x16d   :  { %2005 = vmatpush1.bf16.msra.mxu0 %v4120_v25  ;;  %v4224_v25 = vld [vmem:[#allocation5 + $0x114] ss:$8 sps:$4 sm:$0xff]  }
 0x16e   :  { %2006 = vmatprep.subr.bf16.mxu0 %v4125_v26 }
 0x171   :  { %2007 = vmatpush1.bf16.msra.mxu0 %v4123_v27  ;;  %v4222_v27 = vld [vmem:[#allocation5 + $0x110] ss:$8 sps:$4 sm:$0xff]  }
 0x172   :  { %2008 = vmatprep.subr.bf16.mxu0 %v4128_v28  ;;  %v4227_v28 = vld [vmem:[#allocation5 + $0x124] ss:$8 sps:$4 sm:$0xff]  }
 0x175   :  { %2009 = vmatpush1.bf16.msra.mxu0 %v4126_v29  ;;  %v4225_v29 = vld [vmem:[#allocation5 + $0x120] ss:$8 sps:$4 sm:$0xff]  }
 0x176   :  { %2010 = vmatprep.subr.bf16.mxu0 %v4131_v30  ;;  %v4230_v30 = vld [vmem:[#allocation5 + $0x134] ss:$8 sps:$4 sm:$0xff]  }
 0x179   :  { %2011 = vmatpush1.bf16.msra.mxu0 %v4129_v31  ;;  %v4228_v31 = vld [vmem:[#allocation5 + $0x130] ss:$8 sps:$4 sm:$0xff]  }
 0x17a   :  { %2012 = vmatprep.subr.bf16.mxu0 %v4134_v33  ;;  %v4233_v33 = vld [vmem:[#allocation5 + $0x144] ss:$8 sps:$4 sm:$0xff]  }
 0x17d   :  { %2013 = vmatpush1.bf16.msra.mxu0 %v4132_v34  ;;  %v4231_v34 = vld [vmem:[#allocation5 + $0x140] ss:$8 sps:$4 sm:$0xff]  }
 0x17e   :  { %2014 = vmatprep.subr.bf16.mxu0 %v4137_v35  ;;  %v4236_v35 = vld [vmem:[#allocation5 + $0x154] ss:$8 sps:$4 sm:$0xff]  }
 0x181   :  { %2015 = vmatpush1.bf16.msra.mxu0 %v4135_v36  ;;  %v4234_v36 = vld [vmem:[#allocation5 + $0x150] ss:$8 sps:$4 sm:$0xff]  }
 0x182   :  { %2025 = vmatprep.subr.bf16.mxu0 %v4140_v37  ;;  %v4239_v37 = vld [vmem:[#allocation5 + $0x164] ss:$8 sps:$4 sm:$0xff]  }
 0x184   :  { %2017 = vmatmul.mubr.bf16.vlgmr.msra.gmra.mrb[4].mxu0 %v4585_v12  ;;  %v4153_v12 = vld [vmem:[#allocation2 + $0x700] ss:$24 sps:$4 sm:$0xff]  }
 0x185   :  { %2026 = vmatpush1.bf16.msra.mxu0 %v4138_v38  ;;  %3513 = vmatprep.mubr.msk.bf16.mxu0 %vm1674_vm0, %v4590_v17  ;;  %v4156_v17 = vld [vmem:[#allocation2 + $0x730] ss:$24 sps:$4 sm:$0xff]  }
 0x186   :  { %2027 = vmatprep.subr.bf16.mxu0 %v4143_v39  ;;  %v4237_v38 = vld [vmem:[#allocation5 + $0x160] ss:$8 sps:$4 sm:$0xff]   ;;  %v4242_v39 = vld [vmem:[#allocation5 + $0x174] ss:$8 sps:$4 sm:$0xff]  }
 0x189   :  { %2028 = vmatpush1.bf16.msra.mxu0 %v4141_v40  ;;  %v4240_v40 = vld [vmem:[#allocation5 + $0x170] ss:$8 sps:$4 sm:$0xff]  }
 0x18a   :  { %2029 = vmatprep.subr.bf16.mxu0 %v4146_v41  ;;  %v4245_v41 = vld [vmem:[#allocation5 + $0x184] ss:$8 sps:$4 sm:$0xff]  }
 0x18d   :  { %2030 = vmatpush1.bf16.msra.mxu0 %v4144_v42  ;;  %v4243_v42 = vld [vmem:[#allocation5 + $0x180] ss:$8 sps:$4 sm:$0xff]  }
 0x18e   :  { %2031 = vmatprep.subr.bf16.mxu0 %v4149_v43  ;;  %v4248_v43 = vld [vmem:[#allocation5 + $0x194] ss:$8 sps:$4 sm:$0xff]  }
 0x191   :  { %2032 = vmatpush1.bf16.msra.mxu0 %v4147_v44  ;;  %v4246_v44 = vld [vmem:[#allocation5 + $0x190] ss:$8 sps:$4 sm:$0xff]  }
 0x192   :  { %2033 = vmatprep.subr.bf16.mxu0 %v4152_v45  ;;  %v4251_v45 = vld [vmem:[#allocation5 + $0x1a4] ss:$8 sps:$4 sm:$0xff]  }
 0x195   :  { %2034 = vmatpush1.bf16.msra.mxu0 %v4150_v46  ;;  %v4249_v46 = vld [vmem:[#allocation5 + $0x1a0] ss:$8 sps:$4 sm:$0xff]  }
 0x196   :  { %2035 = vmatprep.subr.bf16.mxu0 %v4155_v47  ;;  %v4254_v47 = vld [vmem:[#allocation5 + $0x1b4] ss:$8 sps:$4 sm:$0xff]  }
 0x199   :  { %2036 = vmatpush1.bf16.msra.mxu0 %v4153_v12  ;;  %v4252_v12 = vld [vmem:[#allocation5 + $0x1b0] ss:$8 sps:$4 sm:$0xff]  }
 0x19a   :  { %2037 = vmatprep.subr.bf16.mxu0 %v4158_v49  ;;  %v4257_v49 = vld [vmem:[#allocation5 + $0x1c4] ss:$8 sps:$4 sm:$0xff]  }
 0x19d   :  { %2038 = vmatpush1.bf16.msra.mxu0 %v4156_v17  ;;  %v370_v17 = vsub.s32 2, %v4618_v60 }
 0x19e   :  { %2039 = vmatprep.subr.bf16.mxu0 %v4161_v50  ;;  %v4315_v50 = vld [vmem:[#allocation7 + $0xc0] ss:$12 sps:$4 sm:$0xff]  }
 0x1a1   :  { %2040 = vmatpush1.bf16.msra.mxu0 %v4159_v51  ;;  %v4316_v51 = vld [vmem:[#allocation7] ss:$12 sps:$4 sm:$0xff]  }
 0x1a2   :  { %2041 = vmatprep.subr.bf16.mxu0 %v4167_v52  ;;  %v4317_v52 = vld [vmem:[#allocation7 + $0xd8] ss:$12 sps:$4 sm:$0xff]  }
 0x1a5   :  { %2042 = vmatpush1.bf16.msra.mxu0 %v4165_v53  ;;  %v4255_v53 = vld [vmem:[#allocation5 + $0x1c0] ss:$8 sps:$4 sm:$0xff]  }
 0x1a6   :  { %2043 = vmatprep.subr.bf16.mxu0 %v4173_v54  ;;  %v4260_v54 = vld [vmem:[#allocation5 + $0x1d4] ss:$8 sps:$4 sm:$0xff]  }
 0x1a9   :  { %2044 = vmatpush1.bf16.msra.mxu0 %v4171_v55  ;;  %v371_v55 = vrot.slane %v4621_v63, %v370_v17 }
 0x1aa   :  { %3512 = vmatprep.subr.msk.bf16.mxu0 %vm1678_vm1, %v4177_v56  ;;  %v4318_v56 = vld [vmem:[#allocation7 + $0x18] ss:$12 sps:$4 sm:$0xff]  }
 0x1ad   :  { %2046 = vmatpush1.bf16.msra.mxu0 %v1692_v58  ;;  %v4258_v58 = vld [vmem:[#allocation5 + $0x1d0] ss:$8 sps:$4 sm:$0xff]  }
 0x1ae   :  { %3651 = vmatprep.subr.bf16.mxu0 %v4315_v50 }
 0x1b0   :  { %2058 = vmatmul.mubr.bf16.vlgmr.msra.gmra.mrb[4].mxu0 %v4605_v62  ;;  %v367_v62 = vrot.slane %v4621_v63, %v366_v0 }
 0x1b1   :  { %3652 = vmatpush3.bf16.msra.mxu0 %v4316_v51 }
 0x1b2   :  { %3653 = vmatprep.subr.bf16.mxu0 %v4317_v52 }
 0x1b5   :  { %3654 = vmatpush3.bf16.msra.mxu0 %v4318_v56 }
 0x1b6   :  { %3655 = vmatprep.subr.bf16.mxu0 %v4319_v57 }
 0x1d7   :  { %v1813_v3 = vpop.f32.mrb[0].mxu0 }
 0x1d8   :  { %v4634_v4 = vpop.f32.mrb[0].mxu1  ;;  %v3731_v6 = vadd.f32 %v1813_v3, %v363_v2  ;;  %v1815_v7 = vpop.f32.mrb[1].mxu0  ;;  %v4320_v2 = vld [vmem:[#allocation7 + $0x30] ss:$12 sps:$4 sm:$0xff]  }
 0x1d9   :  { %v1938_v8 = vpop.f32.mrb[1].mxu1  ;;  %v3732_v9 = vadd.f32 %v1815_v7, %v367_v62  ;;  %v1817_v11 = vpop.f32.mrb[2].mxu0  ;;  %v3733_v1 = vadd.f32 %v4634_v4, %v371_v55  ;;  %v4321_v62 = vld [vmem:[#allocation7 + $0x108] ss:$12 sps:$4 sm:$0xff]   ;;  %3656 = vmatpush3.bf16.msra.mxu0 %v4320_v2 }
 0x1da   :  { %v3734_v10 = vadd.f32 %v1938_v8, %v375_v5  ;;  %v1940_v13 = vpop.f32.mrb[2].mxu1  ;;  %vm2067_vm2 = vcmp.gt.f32.partialorder %v3731_v6, 0.0  ;;  %v2074_v48 = vmul.f32 %v3731_v6, %v4632_v32  ;;  %v1818_v14 = vpop.f32.mrb[3].mxu0  ;;  %v4261_v5 = vld [vmem:[#allocation5 + $0x1e0] ss:$8 sps:$4 sm:$0xff]   ;;  %3657 = vmatprep.subr.bf16.mxu0 %v4321_v62 }
 0x1db   :  { %v1941_v15 = vpop.f32.mrb[3].mxu1  ;;  %vm2068_vm3 = vcmp.gt.f32.partialorder %v3732_v9, 0.0  ;;  %v2075_v16 = vmul.f32 %v3732_v9, %v4632_v32  ;;  %v4266_v3 = vld [vmem:[#allocation5 + $0x1f4] ss:$8 sps:$4 sm:$0xff]   ;;  %vm2069_vm5 = vcmp.gt.f32.partialorder %v3733_v1, 0.0 }
 0x1dc   :  { %vm2070_vm4 = vcmp.gt.f32.partialorder %v3734_v10, 0.0  ;;  %v2077_v18 = vmul.f32 %v3734_v10, %v4632_v32  ;;  %v2080_v19 = vsel %vm2067_vm2, %v3731_v6, %v2074_v48  ;;  %v2076_v6 = vmul.f32 %v3733_v1, %v4632_v32  ;;  %v4322_v7 = vld [vmem:[#allocation7 + $0x48] ss:$12 sps:$4 sm:$0xff]   ;;  %v4323_v8 = vld [vmem:[#allocation7 + $0x120] ss:$12 sps:$4 sm:$0xff]  }
 0x1dd   :  { %v2081_v20 = vsel %vm2068_vm3, %v3732_v9, %v2075_v16  ;;  %v2086_v24 = vpack.c.bf16 %v2080_v19, %v2080_v19  ;;  %v4264_v9 = vld [vmem:[#allocation5 + $0x1f0] ss:$8 sps:$4 sm:$0xff]   ;;  %3658 = vmatpush3.bf16.msra.mxu0 %v4322_v7  ;;  %v4324_v11 = vld [vmem:[#allocation7 + $0x60] ss:$12 sps:$4 sm:$0xff]   ;;  %v4272_v15 = vld [vmem:[#allocation5 + $0x214] ss:$8 sps:$4 sm:$0xff]  }
 0x1de   :  { %v2083_v21 = vsel %vm2070_vm4, %v3734_v10, %v2077_v18  ;;  %v2087_v22 = vpack.c.bf16 %v2081_v20, %v2081_v20  ;;  %v4269_v10 = vld [vmem:[#allocation5 + $0x204] ss:$8 sps:$4 sm:$0xff]   ;;  %v2082_v4 = vsel %vm2069_vm5, %v3733_v1, %v2076_v6  ;;  %3659 = vmatprep.subr.bf16.mxu0 %v4323_v8  ;;  %v4267_v48 = vld [vmem:[#allocation5 + $0x200] ss:$8 sps:$4 sm:$0xff]   ;;  %v4270_v18 = vld [vmem:[#allocation5 + $0x210] ss:$8 sps:$4 sm:$0xff]  }
 0x1df   :  { %v2089_v26 = vpack.c.bf16 %v2083_v21, %v2083_v21  ;;  %v4325_v13 = vld [vmem:[#allocation7 + $0x138] ss:$12 sps:$4 sm:$0xff]   ;;  %v2088_v14 = vpack.c.bf16 %v2082_v4, %v2082_v4  ;;  %v4273_v20 = vld [vmem:[#allocation5 + $0x220] ss:$8 sps:$4 sm:$0xff]   ;;  %v4278_v21 = vld [vmem:[#allocation5 + $0x234] ss:$8 sps:$4 sm:$0xff]  }
 0x1e0   :  { %2712 = vmatprep.mubr.bf16.mxu1 %v2087_v22  ;;  %v4326_v16 = vld [vmem:[#allocation7 + $0x78] ss:$12 sps:$4 sm:$0xff]   ;;  %v4330_v6 = vld [vmem:[#allocation7 + $0xa8] ss:$12 sps:$4 sm:$0xff]   ;;  %v4464_v8 = vmov 0.0  }
 0x1e1   :  { %2713 = vmatmul.mubr.bf16.vlgmr.msra.gmra.mrb[4].mxu1 %v2086_v24  ;;  %3660 = vmatpush3.bf16.msra.mxu0 %v4324_v11  ;;  %v4275_v19 = vld [vmem:[#allocation5 + $0x224] ss:$8 sps:$4 sm:$0xff]   ;;  %v4276_v22 = vld [vmem:[#allocation5 + $0x230] ss:$8 sps:$4 sm:$0xff]   ;;  %v4279_v24 = vld [vmem:[#allocation5 + $0x240] ss:$8 sps:$4 sm:$0xff]  }
 0x1e2   :  { %2722 = vmatpush1.bf16.msra.mxu1 %v4219_v23  ;;  %2753 = vmatprep.mubr.bf16.mxu1 %v2089_v26  ;;  %v4281_v23 = vld [vmem:[#allocation5 + $0x244] ss:$8 sps:$4 sm:$0xff]   ;;  %v4282_v26 = vld [vmem:[#allocation5 + $0x250] ss:$8 sps:$4 sm:$0xff]  }
 0x1e3   :  { %2723 = vmatprep.subr.bf16.mxu1 %v4224_v25  ;;  %3661 = vmatprep.subr.bf16.mxu0 %v4325_v13  ;;  %v4284_v25 = vld [vmem:[#allocation5 + $0x254] ss:$8 sps:$4 sm:$0xff]   ;;  %v4331_v7 = vld [vmem:[#allocation7 + $0x4] ss:$12 sps:$4 sm:$0xff]  }
 0x1e4   :  { %v4335_v4 = vld [vmem:[#allocation7 + $0x64] ss:$12 sps:$4 sm:$0xff]  }
 0x1e5   :  { %3662 = vmatpush3.bf16.msra.mxu0 %v4326_v16  ;;  %v2188_v11 = vld [vmem:[#allocation8 + $0x6] sm:$0x3] }
 0x1e6   :  { %2724 = vmatpush1.bf16.msra.mxu1 %v4222_v27  ;;  %v4287_v27 = vld [vmem:[#allocation5 + $0x264] ss:$8 sps:$4 sm:$0xff]   ;;  %v2193_v13 = vrot.slane %v2188_v11, %v362_v61  ;;  %v4336_v61 = vld [vmem:[#allocation7 + $0x7c] ss:$12 sps:$4 sm:$0xff]  }
 0x1e7   :  { %2725 = vmatprep.subr.bf16.mxu1 %v4227_v28  ;;  %v4285_v28 = vld [vmem:[#allocation5 + $0x260] ss:$8 sps:$4 sm:$0xff]  }
 0x1ea   :  { %2726 = vmatpush1.bf16.msra.mxu1 %v4225_v29  ;;  %v4290_v29 = vld [vmem:[#allocation5 + $0x274] ss:$8 sps:$4 sm:$0xff]  }
 0x1eb   :  { %2727 = vmatprep.subr.bf16.mxu1 %v4230_v30  ;;  %v4288_v30 = vld [vmem:[#allocation5 + $0x270] ss:$8 sps:$4 sm:$0xff]  }
 0x1ee   :  { %2728 = vmatpush1.bf16.msra.mxu1 %v4228_v31  ;;  %v4293_v31 = vld [vmem:[#allocation5 + $0x284] ss:$8 sps:$4 sm:$0xff]  }
 0x1ef   :  { %2729 = vmatprep.subr.bf16.mxu1 %v4233_v33  ;;  %v4291_v33 = vld [vmem:[#allocation5 + $0x280] ss:$8 sps:$4 sm:$0xff]  }
 0x1f2   :  { %2730 = vmatpush1.bf16.msra.mxu1 %v4231_v34  ;;  %v4296_v34 = vld [vmem:[#allocation5 + $0x294] ss:$8 sps:$4 sm:$0xff]  }
 0x1f3   :  { %2731 = vmatprep.subr.bf16.mxu1 %v4236_v35  ;;  %v4294_v35 = vld [vmem:[#allocation5 + $0x290] ss:$8 sps:$4 sm:$0xff]  }
 0x1f6   :  { %2732 = vmatpush1.bf16.msra.mxu1 %v4234_v36  ;;  %v4299_v36 = vld [vmem:[#allocation5 + $0x2a4] ss:$8 sps:$4 sm:$0xff]  }
 0x1f7   :  { %2733 = vmatprep.subr.bf16.mxu1 %v4239_v37  ;;  %v4297_v37 = vld [vmem:[#allocation5 + $0x2a0] ss:$8 sps:$4 sm:$0xff]  }
 0x1fa   :  { %2734 = vmatpush1.bf16.msra.mxu1 %v4237_v38  ;;  %v4302_v38 = vld [vmem:[#allocation5 + $0x2b4] ss:$8 sps:$4 sm:$0xff]  }
 0x1fb   :  { %2735 = vmatprep.subr.bf16.mxu1 %v4242_v39  ;;  %v4300_v39 = vld [vmem:[#allocation5 + $0x2b0] ss:$8 sps:$4 sm:$0xff]  }
 0x1fe   :  { %2736 = vmatpush1.bf16.msra.mxu1 %v4240_v40  ;;  %v4305_v40 = vld [vmem:[#allocation5 + $0x2c4] ss:$8 sps:$4 sm:$0xff]  }
 0x1ff   :  { %2737 = vmatprep.subr.bf16.mxu1 %v4245_v41  ;;  %v4303_v41 = vld [vmem:[#allocation5 + $0x2c0] ss:$8 sps:$4 sm:$0xff]  }
 0x202   :  { %2738 = vmatpush1.bf16.msra.mxu1 %v4243_v42  ;;  %v4308_v42 = vld [vmem:[#allocation5 + $0x2d4] ss:$8 sps:$4 sm:$0xff]  }
 0x203   :  { %2739 = vmatprep.subr.bf16.mxu1 %v4248_v43  ;;  %v4306_v43 = vld [vmem:[#allocation5 + $0x2d0] ss:$8 sps:$4 sm:$0xff]  }
 0x206   :  { %2740 = vmatpush1.bf16.msra.mxu1 %v4246_v44  ;;  %v4311_v44 = vld [vmem:[#allocation5 + $0x2e4] ss:$8 sps:$4 sm:$0xff]  }
 0x207   :  { %2741 = vmatprep.subr.bf16.mxu1 %v4251_v45  ;;  %v4309_v45 = vld [vmem:[#allocation5 + $0x2e0] ss:$8 sps:$4 sm:$0xff]  }
 0x20a   :  { %2742 = vmatpush1.bf16.msra.mxu1 %v4249_v46  ;;  %v4314_v46 = vld [vmem:[#allocation5 + $0x2f4] ss:$8 sps:$4 sm:$0xff]  }
 0x20b   :  { %2743 = vmatprep.subr.bf16.mxu1 %v4254_v47  ;;  %v4312_v47 = vld [vmem:[#allocation5 + $0x2f0] ss:$8 sps:$4 sm:$0xff]  }
 0x20e   :  { %2744 = vmatpush1.bf16.msra.mxu1 %v4252_v12  ;;  %v378_v12 = vsub.s32 4, %v4618_v60 }
 0x20f   :  { %2745 = vmatprep.subr.bf16.mxu1 %v4257_v49  ;;  %v382_v49 = vsub.s32 5, %v4618_v60  ;;  %v4337_v60 = vld [vmem:[#allocation7 + $0x94] ss:$12 sps:$4 sm:$0xff]  }
 0x210   :  { %v379_v17 = vrot.slane %v4621_v63, %v378_v12  ;;  %v3629_v12 = vld [vmem:[#allocation8 + $0x9] ss:$0 sm:$0xff] }
 0x211   :  { %v383_v50 = vrot.slane %v4621_v63, %v382_v49  ;;  %v4328_v63 = vld [vmem:[#allocation7 + $0x90] ss:$12 sps:$4 sm:$0xff]  }
 0x212   :  { %2746 = vmatpush1.bf16.msra.mxu1 %v4255_v53 }
 0x213   :  { %2747 = vmatprep.subr.bf16.mxu1 %v4260_v54 }
 0x216   :  { %2748 = vmatpush1.bf16.msra.mxu1 %v4258_v58 }
 0x217   :  { %2749 = vmatprep.subr.bf16.mxu1 %v4263_v59 }
 0x21a   :  { %2750 = vmatpush1.bf16.msra.mxu1 %v4261_v5  ;;  %v4327_v5 = vld [vmem:[#allocation7 + $0x150] ss:$12 sps:$4 sm:$0xff]  }
 0x21b   :  { %2751 = vmatprep.subr.bf16.mxu1 %v4266_v3  ;;  %3663 = vmatprep.subr.bf16.mxu0 %v4327_v5  ;;  %v4329_v3 = vld [vmem:[#allocation7 + $0x168] ss:$12 sps:$4 sm:$0xff]  }
 0x21c   :  { %3664 = vmatpush3.bf16.msra.mxu0 %v4328_v63 }
 0x21d   :  { %3665 = vmatprep.subr.bf16.mxu0 %v4329_v3  ;;  %v3649_v3 = vld [vmem:[#allocation8 + $0xb] ss:$0 sm:$0xff] }
 0x21e   :  { %2752 = vmatpush1.bf16.msra.mxu1 %v4264_v9  ;;  %v4333_v9 = vld [vmem:[#allocation7 + $0x34] ss:$12 sps:$4 sm:$0xff]  }
 0x21f   :  { %2762 = vmatprep.subr.bf16.mxu1 %v4269_v10  ;;  %v4334_v10 = vld [vmem:[#allocation7 + $0x4c] ss:$12 sps:$4 sm:$0xff]  }
 0x220   :  { %3666 = vmatpush3.bf16.msra.mxu0 %v4330_v6 }
 0x221   :  { %2754 = vmatmul.mubr.bf16.vlgmr.msra.gmra.mrb[4].mxu1 %v2088_v14  ;;  %3711 = vmatprep.subr.bf16.mxu0 %v4464_v8 }
 0x222   :  { %2763 = vmatpush1.bf16.msra.mxu1 %v4267_v48  ;;  %v2197_v48 = vrot.slane %v2188_v11, %v366_v0  ;;  %v4338_v0 = vld [vmem:[#allocation7 + $0xac] ss:$12 sps:$4 sm:$0xff]  }
 0x223   :  { %2764 = vmatprep.subr.bf16.mxu1 %v4272_v15  ;;  %v2806_v15 = vstv %s3610_s18 }
 0x226   :  { %2765 = vmatpush1.bf16.msra.mxu1 %v4270_v18 }
 0x227   :  { %2766 = vmatprep.subr.bf16.mxu1 %v4275_v19 }
 0x22a   :  { %2767 = vmatpush1.bf16.msra.mxu1 %v4273_v20 }
 0x22b   :  { %2768 = vmatprep.subr.bf16.mxu1 %v4278_v21 }
 0x22e   :  { %2769 = vmatpush1.bf16.msra.mxu1 %v4276_v22 }
 0x22f   :  { %2770 = vmatprep.subr.bf16.mxu1 %v4281_v23 }
 0x232   :  { %2771 = vmatpush1.bf16.msra.mxu1 %v4279_v24 }
 0x233   :  { %2772 = vmatprep.subr.bf16.mxu1 %v4284_v25 }
 0x236   :  { %2773 = vmatpush1.bf16.msra.mxu1 %v4282_v26 }
 0x237   :  { %2774 = vmatprep.subr.bf16.mxu1 %v4287_v27 }
 0x23a   :  { %2775 = vmatpush1.bf16.msra.mxu1 %v4285_v28  ;;  %v4339_v28 = vld [vmem:[#allocation7 + $0x8] ss:$12 sps:$4 sm:$0xff]  }
 0x23b   :  { %2776 = vmatprep.subr.bf16.mxu1 %v4290_v29  ;;  %v4340_v29 = vld [vmem:[#allocation7 + $0x20] ss:$12 sps:$4 sm:$0xff]  }
 0x23e   :  { %2777 = vmatpush1.bf16.msra.mxu1 %v4288_v30  ;;  %v4341_v30 = vld [vmem:[#allocation7 + $0x38] ss:$12 sps:$4 sm:$0xff]  }
 0x23f   :  { %2778 = vmatprep.subr.bf16.mxu1 %v4293_v31  ;;  %v4342_v31 = vld [vmem:[#allocation7 + $0x50] ss:$12 sps:$4 sm:$0xff]  }
 0x242   :  { %2779 = vmatpush1.bf16.msra.mxu1 %v4291_v33  ;;  %v4343_v33 = vld [vmem:[#allocation7 + $0x68] ss:$12 sps:$4 sm:$0xff]  }
 0x243   :  { %2780 = vmatprep.subr.bf16.mxu1 %v4296_v34  ;;  %v4344_v34 = vld [vmem:[#allocation7 + $0x80] ss:$12 sps:$4 sm:$0xff]  }
 0x246   :  { %2781 = vmatpush1.bf16.msra.mxu1 %v4294_v35 }
 0x247   :  { %2782 = vmatprep.subr.bf16.mxu1 %v4299_v36  ;;  %v3611_v36 = vld [vmem:[#allocation8 + $0x8] ss:$0 sm:$0xff] }
 0x24a   :  { %2783 = vmatpush1.bf16.msra.mxu1 %v4297_v37 }
 0x24b   :  { %2784 = vmatprep.subr.bf16.mxu1 %v4302_v38 }
 0x24e   :  { %2785 = vmatpush1.bf16.msra.mxu1 %v4300_v39 }
 0x24f   :  { %2786 = vmatprep.subr.bf16.mxu1 %v4305_v40  ;;  %v2990_v40 = vstv %s3628_s19 }
 0x252   :  { %2787 = vmatpush1.bf16.msra.mxu1 %v4303_v41 }
 0x253   :  { %2788 = vmatprep.subr.bf16.mxu1 %v4308_v42 }
 0x256   :  { %2789 = vmatpush1.bf16.msra.mxu1 %v4306_v43 }
 0x257   :  { %2790 = vmatprep.subr.bf16.mxu1 %v4311_v44 }
 0x25a   :  { %2791 = vmatpush1.bf16.msra.mxu1 %v4309_v45 }
 0x25b   :  { %2792 = vmatprep.subr.bf16.mxu1 %v4314_v46  ;;  %v4345_v46 = vld [vmem:[#allocation7 + $0x98] ss:$12 sps:$4 sm:$0xff]  }
 0x25e   :  { %2793 = vmatpush1.bf16.msra.mxu1 %v4312_v47  ;;  %v4346_v47 = vld [vmem:[#allocation7 + $0xb0] ss:$12 sps:$4 sm:$0xff]  }
 0x25f   :  { %3691 = vmatprep.subr.bf16.mxu1 %v4464_v8 }
 0x283   :  { %v2059_v51 = vpop.f32.mrb[4].mxu0 }
 0x284   :  { %v3735_v52 = vadd.f32 %v2059_v51, %v379_v17  ;;  %v2061_v53 = vpop.f32.mrb[5].mxu0  ;;  %v3107_v17 = vstv %s3638_s20 }
 0x285   :  { %v3736_v54 = vadd.f32 %v2061_v53, %v383_v50  ;;  %v2063_v55 = vpop.f32.mrb[6].mxu0 }
 0x286   :  { %vm2071_vm6 = vcmp.gt.f32.partialorder %v3735_v52, 0.0  ;;  %v2078_v56 = vmul.f32 %v3735_v52, %v4632_v32  ;;  %v2064_v57 = vpop.f32.mrb[7].mxu0 }
 0x287   :  { %vm2072_vm7 = vcmp.gt.f32.partialorder %v3736_v54, 0.0  ;;  %v2079_v58 = vmul.f32 %v3736_v54, %v4632_v32  ;;  %v4332_v32 = vld [vmem:[#allocation7 + $0x1c] ss:$12 sps:$4 sm:$0xff]  }
 0x288   :  { %v2084_v59 = vsel %vm2071_vm6, %v3735_v52, %v2078_v56  ;;  %v3639_v57 = vld [vmem:[#allocation8 + $0xa] ss:$0 sm:$0xff] }
 0x289   :  { %v2085_v1 = vsel %vm2072_vm7, %v3736_v54, %v2079_v58  ;;  %v2090_v62 = vpack.c.bf16 %v2084_v59, %v2084_v59  ;;  %v3224_v59 = vstv %s3648_s2 }
 0x28a   :  { %v2091_v2 = vpack.c.bf16 %v2085_v1, %v2085_v1 }
 0x28c   :  { %2794 = vmatprep.mubr.bf16.mxu1 %v2091_v2 }
 0x28d   :  { %2795 = vmatmul.mubr.bf16.vlgmr.msra.gmra.mrb[4].mxu1 %v2090_v62 }
 0x28e   :  { %3692 = vmatpush3.bf16.msra.mxu1 %v4331_v7  ;;  %3707 = vmatprep.mubr.msk.bf16.mxu1 %vm4465_vm10, %v4464_v8 }
 0x28f   :  { %3693 = vmatprep.subr.bf16.mxu1 %v4464_v8 }
 0x292   :  { %3694 = vmatpush3.bf16.msra.mxu1 %v4332_v32 }
 0x293   :  { %3695 = vmatprep.subr.bf16.mxu1 %v4464_v8 }
 0x296   :  { %3696 = vmatpush3.bf16.msra.mxu1 %v4333_v9 }
 0x297   :  { %3697 = vmatprep.subr.bf16.mxu1 %v4464_v8 }
 0x29a   :  { %3698 = vmatpush3.bf16.msra.mxu1 %v4334_v10 }
 0x29b   :  { %3699 = vmatprep.subr.bf16.mxu1 %v4464_v8 }
 0x29e   :  { %3700 = vmatpush3.bf16.msra.mxu1 %v4335_v4 }
 0x29f   :  { %3701 = vmatprep.subr.bf16.mxu1 %v4464_v8 }
 0x2a2   :  { %3702 = vmatpush3.bf16.msra.mxu1 %v4336_v61 }
 0x2a3   :  { %3703 = vmatprep.subr.bf16.mxu1 %v4464_v8 }
 0x2a6   :  { %3704 = vmatpush3.bf16.msra.mxu1 %v4337_v60 }
 0x2a7   :  { %3705 = vmatprep.subr.bf16.mxu1 %v4464_v8 }
 0x2aa   :  { %3706 = vmatpush3.bf16.msra.mxu1 %v4338_v0 }
 0x360   :  { %v2796_v14 = vpop.f32.mrb[4].mxu1 }
 0x361   :  { %v3737_v16 = vadd.f32 %v2796_v14, %v2193_v13  ;;  %v2798_v18 = vpop.f32.mrb[5].mxu1 }
 0x362   :  { %v3738_v19 = vadd.f32 %v2798_v18, %v2197_v48  ;;  %v2800_v20 = vpop.f32.mrb[6].mxu1 }
 0x363   :  { %vm2804_vm8 = vcmp.gt.f32.partialorder %v3737_v16, 0.0  ;;  %v2807_v21 = vmul.f32 %v3737_v16, %v2806_v15  ;;  %v2801_v22 = vpop.f32.mrb[7].mxu1 }
 0x364   :  { %vm2805_vm9 = vcmp.gt.f32.partialorder %v3738_v19, 0.0  ;;  %v2808_v23 = vmul.f32 %v3738_v19, %v2806_v15 }
 0x365   :  { %v2809_v24 = vsel %vm2804_vm8, %v3737_v16, %v2807_v21 }
 0x366   :  { %v2810_v25 = vsel %vm2805_vm9, %v3738_v19, %v2808_v23  ;;  %v2811_v27 = vpack.c.bf16 %v2809_v24, %v2809_v24 }
 0x367   :  { %v2812_v26 = vpack.c.bf16 %v2810_v25, %v2810_v25 }
 0x369   :  { %2980 = vmatprep.mubr.bf16.mxu0 %v2812_v26 }
 0x36a   :  { %2981 = vmatmul.mubr.bf16.vlgmr.msra.gmra.mrb[8].mxu0 %v2811_v27 }
 0x36b   :  { %3727 = vmatprep.mubr.msk.bf16.mxu0 %vm4465_vm10, %v4464_v8  ;;  %3712 = vmatpush3.bf16.msra.mxu0 %v4339_v28 }
 0x36c   :  { %3713 = vmatprep.subr.bf16.mxu0 %v4464_v8 }
 0x36f   :  { %3714 = vmatpush3.bf16.msra.mxu0 %v4340_v29 }
 0x370   :  { %3715 = vmatprep.subr.bf16.mxu0 %v4464_v8 }
 0x373   :  { %3716 = vmatpush3.bf16.msra.mxu0 %v4341_v30 }
 0x374   :  { %3717 = vmatprep.subr.bf16.mxu0 %v4464_v8 }
 0x377   :  { %3718 = vmatpush3.bf16.msra.mxu0 %v4342_v31 }
 0x378   :  { %3719 = vmatprep.subr.bf16.mxu0 %v4464_v8 }
 0x37b   :  { %3720 = vmatpush3.bf16.msra.mxu0 %v4343_v33 }
 0x37c   :  { %3721 = vmatprep.subr.bf16.mxu0 %v4464_v8 }
 0x37f   :  { %3722 = vmatpush3.bf16.msra.mxu0 %v4344_v34 }
 0x380   :  { %3723 = vmatprep.subr.bf16.mxu0 %v4464_v8 }
 0x383   :  { %3724 = vmatpush3.bf16.msra.mxu0 %v4345_v46 }
 0x384   :  { %3725 = vmatprep.subr.bf16.mxu0 %v4464_v8  ;;  %v3238_v8 = vstv %s3650_s21 }
 0x387   :  { %3726 = vmatpush3.bf16.msra.mxu0 %v4346_v47 }
 0x43d   :  { %v3667_v35 = vpop.f32.mrb[8].mxu0 }
 0x43e   :  { %v3668_v37 = vpop.f32.mrb[9].mxu0 }
 0x43f   :  { %v3669_v38 = vadd.f32 %v3668_v37, %v3667_v35  ;;  %v3670_v39 = vpop.f32.mrb[10].mxu0 }
 0x440   :  { %v3671_v41 = vpop.f32.mrb[11].mxu0 }
 0x441   :  { %v2983_v42 = vadd.f32 %v3669_v38, %v3611_v36 }
 0x443   :  { %vm2989_vm11 = vcmp.gt.f32.partialorder %v2983_v42, 0.0  ;;  %v2991_v43 = vmul.f32 %v2990_v40, %v2983_v42 }
 0x445   :  { %v2992_v44 = vsel %vm2989_vm11, %v2983_v42, %v2991_v43 }
 0x446   :  { %v2993_v45 = vpack.c.bf16 %v2992_v44, %v2992_v44 }
 0x448   :  { %3708 = vmatmul.mubr.bf16.vlgmr.msra.gmra.mrb[8].mxu1 %v2993_v45 }
 0x51b   :  { %v3099_v49 = vpop.f32.mrb[8].mxu1 }
 0x51c   :  { %v3100_v50 = vadd.f32 %v3629_v12, %v3099_v49  ;;  %v3709_v51 = vpop.f32.mrb[9].mxu1 }
 0x51d   :  { %v3102_v52 = vpop.f32.mrb[10].mxu1 }
 0x51e   :  { %vm3106_vm12 = vcmp.gt.f32.partialorder %v3100_v50, 0.0  ;;  %v3108_v53 = vmul.f32 %v3107_v17, %v3100_v50  ;;  %v3710_v54 = vpop.f32.mrb[11].mxu1 }
 0x520   :  { %v3109_v55 = vsel %vm3106_vm12, %v3100_v50, %v3108_v53 }
 0x521   :  { %v3110_v56 = vpack.c.bf16 %v3109_v55, %v3109_v55 }
 0x523   :  { %3728 = vmatmul.mubr.bf16.vlgmr.msra.gmra.mrb[12].mxu0 %v3110_v56 }
 0x5f6   :  { %v3216_v58 = vpop.f32.mrb[12].mxu0 }
 0x5f7   :  { %v3217_v1 = vadd.f32 %v3639_v57, %v3216_v58  ;;  %v3729_v2 = vpop.f32.mrb[13].mxu0 }
 0x5f8   :  { %v3219_v62 = vpop.f32.mrb[14].mxu0 }
 0x5f9   :  { %v3225_v5 = vmul.f32 %v3224_v59, %v3217_v1  ;;  %v3730_v63 = vpop.f32.mrb[15].mxu0  ;;  %vm3223_vm13 = vcmp.gt.f32.partialorder %v3217_v1, 0.0 }
 0x5fb   :  { %v3226_v6 = vsel %vm3223_vm13, %v3217_v1, %v3225_v5 }
 0x5fc   :  { %v3234_v7 = vmul.f32 %v3649_v3, %v3226_v6 }
 0x5fe   :  { %3235 = vadd.xlane.f32.xlu0 %v3234_v7 }
 0x68b   :  { %v3236_v32 = vpop.xlane.xlu0 %3235 }
 0x68c   :  { %v3239_v9 = vadd.f32 %v3238_v8, %v3236_v32 }
 0x68e   :  { %3241 = vst.msk [vmem:[%s4680_s6] sm:$0xff] %vm3240_vm14, %v3239_v9 }
 0x68f   :  { %3246 = vsyncpa [#allocation3], 1 }
 0x690   :  { %3247 = vsyncpa [#allocation6], 1 }
 0x691   :  { %3248 = vsyncpa [#allocation9], 1 }
 0x692   :  { %3249 = vsyncpa [#allocation4], 1 }

</bundles_post_ra>
